<compile_context>
chip_gen: v7x
topology: tpu7x:2x2x1
jax: 0.10.0
libtpu: 0.0.40
codegen_flags: <defaults>
</compile_context>

<pallas_src>
import jax
import jax.numpy as jnp
from jax.experimental import pallas as pl
from jax.experimental.pallas import tpu as pltpu

# ----------------------------------------------------------------------------
# Model configuration (small shapes; embedding_dim == hidden_dim is required
# by the module's own wiring when tie_weights=True with a single layer).
# VOCAB=128 keeps the fused logits store 128-lane dense.
# ----------------------------------------------------------------------------
VOCAB = 128
EMB = 32          # embedding_dim
HID = 32          # hidden_dim (== EMB, see note above)
T = 8             # bptt_len
B = 2             # batch size
DEPTH = 2         # recurrence_depth (block 0 is "first", block 1 is not)


# ----------------------------------------------------------------------------
# Fused Pallas kernel: token gather + full RHN recurrence + tied fc1.
#
#   ids_ref : (T*B,)        token ids, time-major, int32, SMEM
#   xgt_ref : (VOCAB, 3H)   precomputed  emb_w @ [W|W_C] + folded block-0 bias
#   h0_ref  : (B, H)        initial hidden state
#   r0_ref  : (H, 3H)       [R_H | R_T | R_C]   (block 0, no bias)
#   r1_ref  : (H, 3H)       [R_H | R_T | R_C]   (block 1)
#   b1_ref  : (1, 3H)       (bR1 | bRC1)
#   fcw_ref : (H, VOCAB)    fc1 weight (tied embedding, pre-transposed)
#   fcb_ref : (1, VOCAB)    fc1 bias
#
#   logits_ref : (T*B, VOCAB)   single lane-dense slab store
#   hfin_ref   : (B, H)
# ----------------------------------------------------------------------------
def rhn_fused_kernel(ids_ref, xgt_ref, h0_ref, r0_ref, r1_ref, b1_ref,
                     fcw_ref, fcb_ref, logits_ref, hfin_ref):
    H = HID

    # In-kernel gather of the precomputed per-token input projections.
    # 16 dynamic-row reads from the VMEM-resident table; independent of the
    # hidden state, so fully off the serial dependency chain.
    rows = [xgt_ref[pl.ds(ids_ref[k], 1), :] for k in range(T * B)]
    xg_all = jnp.concatenate(rows, axis=0)                      # (T*B, 3H)

    # Loop-invariant operands, loaded / broadcast once (hoisted out of loop).
    r0 = r0_ref[...]
    r1 = r1_ref[...]
    b1 = jnp.broadcast_to(b1_ref[...], (B, 3 * H))

    s = h0_ref[...]                       # (B, H) carried hidden state
    states = []

    # T is small and static -> fully unrolled straight-line code; only the
    # two recurrent matmuls per step sit on the serial dependency chain.
    for t in range(T):
        # --- Highway block 0 (first=True, couple=False) --------------------
        g0 = xg_all[t * B:(t + 1) * B, :] + jnp.dot(
            s, r0, preferred_element_type=jnp.float32)          # (B, 3H)
        h = jnp.tanh(g0[:, :H])
        tc = jax.nn.sigmoid(g0[:, H:])                          # [t | c]
        s = h * tc[:, :H] + s * tc[:, H:]

        # --- Highway block 1 (first=False, couple=False) --------------------
        g1 = jnp.dot(s, r1, preferred_element_type=jnp.float32) + b1
        h = jnp.tanh(g1[:, :H])
        tc = jax.nn.sigmoid(g1[:, H:])
        s = h * tc[:, :H] + s * tc[:, H:]

        states.append(s)

    # Final hidden state written exactly once.
    hfin_ref[...] = s.astype(hfin_ref.dtype)

    # fc1 (tied weight) hoisted out of the loop: one (T*B,H)@(H,V) matmul and
    # one contiguous, 128-lane-dense slab store.
    out = jnp.concatenate(states, axis=0)                       # (T*B, H)
    logits_ref[...] = (jnp.dot(out, fcw_ref[...],
                               preferred_element_type=jnp.float32)
                       + fcb_ref[...]).astype(logits_ref.dtype)


def run_rhn_fused(ids, xg_table, h0, r0, r1, b1, fcw, fcb):
    smem = pl.BlockSpec(memory_space=pltpu.MemorySpace.SMEM)
    vmem = pl.BlockSpec(memory_space=pltpu.MemorySpace.VMEM)
    return pl.pallas_call(
        rhn_fused_kernel,
        out_shape=(jax.ShapeDtypeStruct((T * B, VOCAB), jnp.float32),
                   jax.ShapeDtypeStruct((B, HID), jnp.float32)),
        in_specs=[smem] + [vmem] * 7,
        out_specs=(vmem, vmem),
    )(ids, xg_table, h0, r0, r1, b1, fcw, fcb)


# ----------------------------------------------------------------------------
# One-time host-side parameter preparation: concat recurrent weights, fold
# biases, bake the block-0 input projection into a (VOCAB, 3H) table, and
# pre-transpose the tied fc1 weight.
# NOTE: if emb_w is ever updated (training / reload), this table and fcw must
# be regenerated or the weight tie silently breaks.
# ----------------------------------------------------------------------------
def prep_params(params):
    (emb_w, fc_b,
     W0, bW0, WC0, bWC0, R0, bR0, RC0, bRC0,
     R1, bR1, RC1, bRC1) = params
    wx = jnp.concatenate([W0, WC0], axis=1)                       # (E, 3H)
    b0 = (jnp.concatenate([bW0, bWC0], axis=1)
          + jnp.concatenate([bR0, bRC0], axis=1))                 # (1, 3H)
    xg_table = emb_w @ wx + b0                                    # (V, 3H)
    r0 = jnp.concatenate([R0, RC0], axis=1)                       # (H, 3H)
    r1 = jnp.concatenate([R1, RC1], axis=1)                       # (H, 3H)
    b1 = jnp.concatenate([bR1, bRC1], axis=1)                     # (1, 3H)
    fcw = emb_w.T                                                 # (H, V) tied
    return (xg_table, r0, r1, b1, fcw, fc_b)


# ----------------------------------------------------------------------------
# Full RHN forward: ONE fused kernel (gather + recurrence + fc1).
# ----------------------------------------------------------------------------
@jax.jit
def rhn_forward(x, hidden, prepped):
    (xg_table, r0, r1, b1, fcw, fcb) = prepped
    ids = x.reshape(T * B).astype(jnp.int32)          # time-major flat ids
    logits_flat, h_final = run_rhn_fused(ids, xg_table, hidden,
                                         r0, r1, b1, fcw, fcb)
    return logits_flat.reshape(T, B, VOCAB), h_final


# ----------------------------------------------------------------------------
# Pure-JAX reference (mirrors the PyTorch module exactly, eval mode).
# ----------------------------------------------------------------------------
def ref_forward(x, hidden, params):
    (emb_w, fc_b,
     W0, bW0, WC0, bWC0, R0, bR0, RC0, bRC0,
     R1, bR1, RC1, bRC1) = params
    emb = emb_w[x]
    outs = []
    s = hidden
    for ti in range(T):
        xt = emb[ti]
        wht = xt @ W0 + bW0[0]
        rht = s @ R0 + bR0[0]
        h = jnp.tanh(wht[:, :HID] + rht[:, :HID])
        tt = jax.nn.sigmoid(wht[:, HID:] + rht[:, HID:])
        c = jax.nn.sigmoid(xt @ WC0 + bWC0[0] + s @ RC0 + bRC0[0])
        s = h * tt + s * c
        rht = s @ R1 + bR1[0]
        h = jnp.tanh(rht[:, :HID])
        tt = jax.nn.sigmoid(rht[:, HID:])
        c = jax.nn.sigmoid(s @ RC1 + bRC1[0])
        s = h * tt + s * c
        outs.append(s)
    out = jnp.stack(outs)
    logits = out.reshape(T * B, EMB) @ emb_w.T + fc_b[0]
    return logits.reshape(T, B, VOCAB), s


# ----------------------------------------------------------------------------
# Deterministic parameter init (shapes follow the module's __init__).
# ----------------------------------------------------------------------------
def make_params(key):
    ks = jax.random.split(key, 16)

    def uni(k, shape, bound):
        return jax.random.uniform(k, shape, jnp.float32, -bound, bound)

    # tied embedding / fc1 weight, init U(-0.1, 0.1); fc1 bias = 0
    emb_w = uni(ks[0], (VOCAB, EMB), 0.1)
    fc_b = jnp.zeros((1, VOCAB), jnp.float32)

    kE = 1.0 / jnp.sqrt(EMB)
    kH = 1.0 / jnp.sqrt(HID)
    # block 0 (first=True): W (E->2H), W_C (E->H), R (H->2H), R_C (H->H)
    W0 = uni(ks[1], (EMB, 2 * HID), kE);  bW0 = uni(ks[2], (1, 2 * HID), kE)
    WC0 = uni(ks[3], (EMB, HID), kE);     bWC0 = uni(ks[4], (1, HID), kE)
    R0 = uni(ks[5], (HID, 2 * HID), kE);  bR0 = uni(ks[6], (1, 2 * HID), kE)
    RC0 = uni(ks[7], (HID, HID), kE);     bRC0 = uni(ks[8], (1, HID), kE)
    # block 1 (first=False): R (H->2H), R_C (H->H)
    R1 = uni(ks[9], (HID, 2 * HID), kH);  bR1 = uni(ks[10], (1, 2 * HID), kH)
    RC1 = uni(ks[11], (HID, HID), kH);    bRC1 = uni(ks[12], (1, HID), kH)

    return (emb_w, fc_b,
            W0, bW0, WC0, bWC0, R0, bR0, RC0, bRC0,
            R1, bR1, RC1, bRC1)


if __name__ == "__main__":
    key = jax.random.PRNGKey(0)
    kp, kx = jax.random.split(key)
    params = make_params(kp)
    prepped = prep_params(params)      # concat/fold/bake once, outside the jit

    # token indices (bptt_len, bs) and zero-initialized hidden state (bs, H)
    x = jax.random.randint(kx, (T, B), 0, VOCAB, dtype=jnp.int32)
    hidden0 = jnp.zeros((B, HID), jnp.float32)

    logits, h_final = rhn_forward(x, hidden0, prepped)
    logits, h_final = jax.block_until_ready((logits, h_final))

    ref_logits, ref_h = ref_forward(x, hidden0, params)

    assert logits.shape == (T, B, VOCAB)
    assert h_final.shape == (B, HID)
    assert jnp.allclose(logits, ref_logits, atol=1e-3, rtol=1e-3)
    assert jnp.allclose(h_final, ref_h, atol=1e-3, rtol=1e-3)

    # TODO(synk): dropout paths (embedded_dropout / LockedDropout / rhn_drop_mask)
    # are identity in eval mode and are intentionally not implemented in-kernel.
    print("KERNEL_OK")
</pallas_src>

<mosaic_0001>
module attributes {stable_mosaic.version = 11 : i64} {
  func.func @rhn_fused_kernel(%arg0: memref<16xi32, #tpu.memory_space<smem>>, %arg1: memref<128x96xf32, #tpu.memory_space<vmem>>, %arg2: memref<2x32xf32, #tpu.memory_space<vmem>>, %arg3: memref<32x96xf32, #tpu.memory_space<vmem>>, %arg4: memref<32x96xf32, #tpu.memory_space<vmem>>, %arg5: memref<1x96xf32, #tpu.memory_space<vmem>>, %arg6: memref<32x128xf32, #tpu.memory_space<vmem>>, %arg7: memref<1x128xf32, #tpu.memory_space<vmem>>, %arg8: memref<16x128xf32, #tpu.memory_space<vmem>>, %arg9: memref<2x32xf32, #tpu.memory_space<vmem>>) attributes {dimension_semantics = [], scalar_prefetch = 0 : i64, scratch_operands = 0 : i64, tpu.core_type = #tpu.core_type<tc>} {
    %c0 = arith.constant 0 : index
    %0 = memref.load %arg0[%c0] : memref<16xi32, #tpu.memory_space<smem>>
    %1 = arith.index_cast %0 : i32 to index
    %c0_0 = arith.constant 0 : index
    %2 = vector.load %arg1[%1, %c0_0] : memref<128x96xf32, #tpu.memory_space<vmem>>, vector<1x96xf32>
    %c1 = arith.constant 1 : index
    %3 = memref.load %arg0[%c1] : memref<16xi32, #tpu.memory_space<smem>>
    %4 = arith.index_cast %3 : i32 to index
    %c0_1 = arith.constant 0 : index
    %5 = vector.load %arg1[%4, %c0_1] : memref<128x96xf32, #tpu.memory_space<vmem>>, vector<1x96xf32>
    %c2 = arith.constant 2 : index
    %6 = memref.load %arg0[%c2] : memref<16xi32, #tpu.memory_space<smem>>
    %7 = arith.index_cast %6 : i32 to index
    %c0_2 = arith.constant 0 : index
    %8 = vector.load %arg1[%7, %c0_2] : memref<128x96xf32, #tpu.memory_space<vmem>>, vector<1x96xf32>
    %c3 = arith.constant 3 : index
    %9 = memref.load %arg0[%c3] : memref<16xi32, #tpu.memory_space<smem>>
    %10 = arith.index_cast %9 : i32 to index
    %c0_3 = arith.constant 0 : index
    %11 = vector.load %arg1[%10, %c0_3] : memref<128x96xf32, #tpu.memory_space<vmem>>, vector<1x96xf32>
    %c4 = arith.constant 4 : index
    %12 = memref.load %arg0[%c4] : memref<16xi32, #tpu.memory_space<smem>>
    %13 = arith.index_cast %12 : i32 to index
    %c0_4 = arith.constant 0 : index
    %14 = vector.load %arg1[%13, %c0_4] : memref<128x96xf32, #tpu.memory_space<vmem>>, vector<1x96xf32>
    %c5 = arith.constant 5 : index
    %15 = memref.load %arg0[%c5] : memref<16xi32, #tpu.memory_space<smem>>
    %16 = arith.index_cast %15 : i32 to index
    %c0_5 = arith.constant 0 : index
    %17 = vector.load %arg1[%16, %c0_5] : memref<128x96xf32, #tpu.memory_space<vmem>>, vector<1x96xf32>
    %c6 = arith.constant 6 : index
    %18 = memref.load %arg0[%c6] : memref<16xi32, #tpu.memory_space<smem>>
    %19 = arith.index_cast %18 : i32 to index
    %c0_6 = arith.constant 0 : index
    %20 = vector.load %arg1[%19, %c0_6] : memref<128x96xf32, #tpu.memory_space<vmem>>, vector<1x96xf32>
    %c7 = arith.constant 7 : index
    %21 = memref.load %arg0[%c7] : memref<16xi32, #tpu.memory_space<smem>>
    %22 = arith.index_cast %21 : i32 to index
    %c0_7 = arith.constant 0 : index
    %23 = vector.load %arg1[%22, %c0_7] : memref<128x96xf32, #tpu.memory_space<vmem>>, vector<1x96xf32>
    %c8 = arith.constant 8 : index
    %24 = memref.load %arg0[%c8] : memref<16xi32, #tpu.memory_space<smem>>
    %25 = arith.index_cast %24 : i32 to index
    %c0_8 = arith.constant 0 : index
    %26 = vector.load %arg1[%25, %c0_8] : memref<128x96xf32, #tpu.memory_space<vmem>>, vector<1x96xf32>
    %c9 = arith.constant 9 : index
    %27 = memref.load %arg0[%c9] : memref<16xi32, #tpu.memory_space<smem>>
    %28 = arith.index_cast %27 : i32 to index
    %c0_9 = arith.constant 0 : index
    %29 = vector.load %arg1[%28, %c0_9] : memref<128x96xf32, #tpu.memory_space<vmem>>, vector<1x96xf32>
    %c10 = arith.constant 10 : index
    %30 = memref.load %arg0[%c10] : memref<16xi32, #tpu.memory_space<smem>>
    %31 = arith.index_cast %30 : i32 to index
    %c0_10 = arith.constant 0 : index
    %32 = vector.load %arg1[%31, %c0_10] : memref<128x96xf32, #tpu.memory_space<vmem>>, vector<1x96xf32>
    %c11 = arith.constant 11 : index
    %33 = memref.load %arg0[%c11] : memref<16xi32, #tpu.memory_space<smem>>
    %34 = arith.index_cast %33 : i32 to index
    %c0_11 = arith.constant 0 : index
    %35 = vector.load %arg1[%34, %c0_11] : memref<128x96xf32, #tpu.memory_space<vmem>>, vector<1x96xf32>
    %c12 = arith.constant 12 : index
    %36 = memref.load %arg0[%c12] : memref<16xi32, #tpu.memory_space<smem>>
    %37 = arith.index_cast %36 : i32 to index
    %c0_12 = arith.constant 0 : index
    %38 = vector.load %arg1[%37, %c0_12] : memref<128x96xf32, #tpu.memory_space<vmem>>, vector<1x96xf32>
    %c13 = arith.constant 13 : index
    %39 = memref.load %arg0[%c13] : memref<16xi32, #tpu.memory_space<smem>>
    %40 = arith.index_cast %39 : i32 to index
    %c0_13 = arith.constant 0 : index
    %41 = vector.load %arg1[%40, %c0_13] : memref<128x96xf32, #tpu.memory_space<vmem>>, vector<1x96xf32>
    %c14 = arith.constant 14 : index
    %42 = memref.load %arg0[%c14] : memref<16xi32, #tpu.memory_space<smem>>
    %43 = arith.index_cast %42 : i32 to index
    %c0_14 = arith.constant 0 : index
    %44 = vector.load %arg1[%43, %c0_14] : memref<128x96xf32, #tpu.memory_space<vmem>>, vector<1x96xf32>
    %c15 = arith.constant 15 : index
    %45 = memref.load %arg0[%c15] : memref<16xi32, #tpu.memory_space<smem>>
    %46 = arith.index_cast %45 : i32 to index
    %c0_15 = arith.constant 0 : index
    %47 = vector.load %arg1[%46, %c0_15] : memref<128x96xf32, #tpu.memory_space<vmem>>, vector<1x96xf32>
    %48 = tpu.concatenate %2, %5, %8, %11, %14, %17, %20, %23, %26, %29, %32, %35, %38, %41, %44, %47 in 0 : vector<1x96xf32>, vector<1x96xf32>, vector<1x96xf32>, vector<1x96xf32>, vector<1x96xf32>, vector<1x96xf32>, vector<1x96xf32>, vector<1x96xf32>, vector<1x96xf32>, vector<1x96xf32>, vector<1x96xf32>, vector<1x96xf32>, vector<1x96xf32>, vector<1x96xf32>, vector<1x96xf32>, vector<1x96xf32> -> vector<16x96xf32>
    %c0_16 = arith.constant 0 : index
    %c0_17 = arith.constant 0 : index
    %49 = vector.load %arg3[%c0_16, %c0_17] : memref<32x96xf32, #tpu.memory_space<vmem>>, vector<32x96xf32>
    %c0_18 = arith.constant 0 : index
    %c0_19 = arith.constant 0 : index
    %50 = vector.load %arg4[%c0_18, %c0_19] : memref<32x96xf32, #tpu.memory_space<vmem>>, vector<32x96xf32>
    %c0_20 = arith.constant 0 : index
    %c0_21 = arith.constant 0 : index
    %51 = vector.load %arg5[%c0_20, %c0_21] : memref<1x96xf32, #tpu.memory_space<vmem>>, vector<1x96xf32>
    %52 = vector.shape_cast %51 : vector<1x96xf32> to vector<1x96xf32>
    %53 = vector.broadcast %52 : vector<1x96xf32> to vector<2x96xf32>
    %c0_22 = arith.constant 0 : index
    %c0_23 = arith.constant 0 : index
    %54 = vector.load %arg2[%c0_22, %c0_23] : memref<2x32xf32, #tpu.memory_space<vmem>>, vector<2x32xf32>
    %55 = vector.extract_strided_slice %48 {offsets = [0, 0], sizes = [2, 96], strides = [1, 1]} : vector<16x96xf32> to vector<2x96xf32>
    %cst = arith.constant dense<0.000000e+00> : vector<2x96xf32>
    %56 = tpu.matmul %54, %49, %cst {dimension_numbers = #tpu.dot_dimension_numbers<[1], [0], [0], [1], [0, 0, 1, 1], [], []>} : vector<2x32xf32>, vector<32x96xf32>, vector<2x96xf32> -> vector<2x96xf32>
    %57 = arith.addf %55, %56 : vector<2x96xf32>
    %58 = vector.extract_strided_slice %57 {offsets = [0, 0], sizes = [2, 32], strides = [1, 1]} : vector<2x96xf32> to vector<2x32xf32>
    %59 = math.tanh %58 : vector<2x32xf32>
    %60 = vector.extract_strided_slice %57 {offsets = [0, 32], sizes = [2, 64], strides = [1, 1]} : vector<2x96xf32> to vector<2x64xf32>
    %61 = arith.negf %60 : vector<2x64xf32>
    %62 = math.exp %61 : vector<2x64xf32>
    %cst_24 = arith.constant 1.000000e+00 : f32
    %63 = vector.broadcast %cst_24 : f32 to vector<2x64xf32>
    %64 = arith.addf %63, %62 : vector<2x64xf32>
    %65 = arith.divf %63, %64 : vector<2x64xf32>
    %66 = vector.extract_strided_slice %65 {offsets = [0, 0], sizes = [2, 32], strides = [1, 1]} : vector<2x64xf32> to vector<2x32xf32>
    %67 = arith.mulf %59, %66 : vector<2x32xf32>
    %68 = vector.extract_strided_slice %65 {offsets = [0, 32], sizes = [2, 32], strides = [1, 1]} : vector<2x64xf32> to vector<2x32xf32>
    %69 = arith.mulf %54, %68 : vector<2x32xf32>
    %70 = arith.addf %67, %69 : vector<2x32xf32>
    %cst_25 = arith.constant dense<0.000000e+00> : vector<2x96xf32>
    %71 = tpu.matmul %70, %50, %cst_25 {dimension_numbers = #tpu.dot_dimension_numbers<[1], [0], [0], [1], [0, 0, 1, 1], [], []>} : vector<2x32xf32>, vector<32x96xf32>, vector<2x96xf32> -> vector<2x96xf32>
    %72 = arith.addf %71, %53 : vector<2x96xf32>
    %73 = vector.extract_strided_slice %72 {offsets = [0, 0], sizes = [2, 32], strides = [1, 1]} : vector<2x96xf32> to vector<2x32xf32>
    %74 = math.tanh %73 : vector<2x32xf32>
    %75 = vector.extract_strided_slice %72 {offsets = [0, 32], sizes = [2, 64], strides = [1, 1]} : vector<2x96xf32> to vector<2x64xf32>
    %76 = arith.negf %75 : vector<2x64xf32>
    %77 = math.exp %76 : vector<2x64xf32>
    %cst_26 = arith.constant 1.000000e+00 : f32
    %78 = vector.broadcast %cst_26 : f32 to vector<2x64xf32>
    %79 = arith.addf %78, %77 : vector<2x64xf32>
    %80 = arith.divf %78, %79 : vector<2x64xf32>
    %81 = vector.extract_strided_slice %80 {offsets = [0, 0], sizes = [2, 32], strides = [1, 1]} : vector<2x64xf32> to vector<2x32xf32>
    %82 = arith.mulf %74, %81 : vector<2x32xf32>
    %83 = vector.extract_strided_slice %80 {offsets = [0, 32], sizes = [2, 32], strides = [1, 1]} : vector<2x64xf32> to vector<2x32xf32>
    %84 = arith.mulf %70, %83 : vector<2x32xf32>
    %85 = arith.addf %82, %84 : vector<2x32xf32>
    %86 = vector.extract_strided_slice %48 {offsets = [2, 0], sizes = [2, 96], strides = [1, 1]} : vector<16x96xf32> to vector<2x96xf32>
    %cst_27 = arith.constant dense<0.000000e+00> : vector<2x96xf32>
    %87 = tpu.matmul %85, %49, %cst_27 {dimension_numbers = #tpu.dot_dimension_numbers<[1], [0], [0], [1], [0, 0, 1, 1], [], []>} : vector<2x32xf32>, vector<32x96xf32>, vector<2x96xf32> -> vector<2x96xf32>
    %88 = arith.addf %86, %87 : vector<2x96xf32>
    %89 = vector.extract_strided_slice %88 {offsets = [0, 0], sizes = [2, 32], strides = [1, 1]} : vector<2x96xf32> to vector<2x32xf32>
    %90 = math.tanh %89 : vector<2x32xf32>
    %91 = vector.extract_strided_slice %88 {offsets = [0, 32], sizes = [2, 64], strides = [1, 1]} : vector<2x96xf32> to vector<2x64xf32>
    %92 = arith.negf %91 : vector<2x64xf32>
    %93 = math.exp %92 : vector<2x64xf32>
    %cst_28 = arith.constant 1.000000e+00 : f32
    %94 = vector.broadcast %cst_28 : f32 to vector<2x64xf32>
    %95 = arith.addf %94, %93 : vector<2x64xf32>
    %96 = arith.divf %94, %95 : vector<2x64xf32>
    %97 = vector.extract_strided_slice %96 {offsets = [0, 0], sizes = [2, 32], strides = [1, 1]} : vector<2x64xf32> to vector<2x32xf32>
    %98 = arith.mulf %90, %97 : vector<2x32xf32>
    %99 = vector.extract_strided_slice %96 {offsets = [0, 32], sizes = [2, 32], strides = [1, 1]} : vector<2x64xf32> to vector<2x32xf32>
    %100 = arith.mulf %85, %99 : vector<2x32xf32>
    %101 = arith.addf %98, %100 : vector<2x32xf32>
    %cst_29 = arith.constant dense<0.000000e+00> : vector<2x96xf32>
    %102 = tpu.matmul %101, %50, %cst_29 {dimension_numbers = #tpu.dot_dimension_numbers<[1], [0], [0], [1], [0, 0, 1, 1], [], []>} : vector<2x32xf32>, vector<32x96xf32>, vector<2x96xf32> -> vector<2x96xf32>
    %103 = arith.addf %102, %53 : vector<2x96xf32>
    %104 = vector.extract_strided_slice %103 {offsets = [0, 0], sizes = [2, 32], strides = [1, 1]} : vector<2x96xf32> to vector<2x32xf32>
    %105 = math.tanh %104 : vector<2x32xf32>
    %106 = vector.extract_strided_slice %103 {offsets = [0, 32], sizes = [2, 64], strides = [1, 1]} : vector<2x96xf32> to vector<2x64xf32>
    %107 = arith.negf %106 : vector<2x64xf32>
    %108 = math.exp %107 : vector<2x64xf32>
    %cst_30 = arith.constant 1.000000e+00 : f32
    %109 = vector.broadcast %cst_30 : f32 to vector<2x64xf32>
    %110 = arith.addf %109, %108 : vector<2x64xf32>
    %111 = arith.divf %109, %110 : vector<2x64xf32>
    %112 = vector.extract_strided_slice %111 {offsets = [0, 0], sizes = [2, 32], strides = [1, 1]} : vector<2x64xf32> to vector<2x32xf32>
    %113 = arith.mulf %105, %112 : vector<2x32xf32>
    %114 = vector.extract_strided_slice %111 {offsets = [0, 32], sizes = [2, 32], strides = [1, 1]} : vector<2x64xf32> to vector<2x32xf32>
    %115 = arith.mulf %101, %114 : vector<2x32xf32>
    %116 = arith.addf %113, %115 : vector<2x32xf32>
    %117 = vector.extract_strided_slice %48 {offsets = [4, 0], sizes = [2, 96], strides = [1, 1]} : vector<16x96xf32> to vector<2x96xf32>
    %cst_31 = arith.constant dense<0.000000e+00> : vector<2x96xf32>
    %118 = tpu.matmul %116, %49, %cst_31 {dimension_numbers = #tpu.dot_dimension_numbers<[1], [0], [0], [1], [0, 0, 1, 1], [], []>} : vector<2x32xf32>, vector<32x96xf32>, vector<2x96xf32> -> vector<2x96xf32>
    %119 = arith.addf %117, %118 : vector<2x96xf32>
    %120 = vector.extract_strided_slice %119 {offsets = [0, 0], sizes = [2, 32], strides = [1, 1]} : vector<2x96xf32> to vector<2x32xf32>
    %121 = math.tanh %120 : vector<2x32xf32>
    %122 = vector.extract_strided_slice %119 {offsets = [0, 32], sizes = [2, 64], strides = [1, 1]} : vector<2x96xf32> to vector<2x64xf32>
    %123 = arith.negf %122 : vector<2x64xf32>
    %124 = math.exp %123 : vector<2x64xf32>
    %cst_32 = arith.constant 1.000000e+00 : f32
    %125 = vector.broadcast %cst_32 : f32 to vector<2x64xf32>
    %126 = arith.addf %125, %124 : vector<2x64xf32>
    %127 = arith.divf %125, %126 : vector<2x64xf32>
    %128 = vector.extract_strided_slice %127 {offsets = [0, 0], sizes = [2, 32], strides = [1, 1]} : vector<2x64xf32> to vector<2x32xf32>
    %129 = arith.mulf %121, %128 : vector<2x32xf32>
    %130 = vector.extract_strided_slice %127 {offsets = [0, 32], sizes = [2, 32], strides = [1, 1]} : vector<2x64xf32> to vector<2x32xf32>
    %131 = arith.mulf %116, %130 : vector<2x32xf32>
    %132 = arith.addf %129, %131 : vector<2x32xf32>
    %cst_33 = arith.constant dense<0.000000e+00> : vector<2x96xf32>
    %133 = tpu.matmul %132, %50, %cst_33 {dimension_numbers = #tpu.dot_dimension_numbers<[1], [0], [0], [1], [0, 0, 1, 1], [], []>} : vector<2x32xf32>, vector<32x96xf32>, vector<2x96xf32> -> vector<2x96xf32>
    %134 = arith.addf %133, %53 : vector<2x96xf32>
    %135 = vector.extract_strided_slice %134 {offsets = [0, 0], sizes = [2, 32], strides = [1, 1]} : vector<2x96xf32> to vector<2x32xf32>
    %136 = math.tanh %135 : vector<2x32xf32>
    %137 = vector.extract_strided_slice %134 {offsets = [0, 32], sizes = [2, 64], strides = [1, 1]} : vector<2x96xf32> to vector<2x64xf32>
    %138 = arith.negf %137 : vector<2x64xf32>
    %139 = math.exp %138 : vector<2x64xf32>
    %cst_34 = arith.constant 1.000000e+00 : f32
    %140 = vector.broadcast %cst_34 : f32 to vector<2x64xf32>
    %141 = arith.addf %140, %139 : vector<2x64xf32>
    %142 = arith.divf %140, %141 : vector<2x64xf32>
    %143 = vector.extract_strided_slice %142 {offsets = [0, 0], sizes = [2, 32], strides = [1, 1]} : vector<2x64xf32> to vector<2x32xf32>
    %144 = arith.mulf %136, %143 : vector<2x32xf32>
    %145 = vector.extract_strided_slice %142 {offsets = [0, 32], sizes = [2, 32], strides = [1, 1]} : vector<2x64xf32> to vector<2x32xf32>
    %146 = arith.mulf %132, %145 : vector<2x32xf32>
    %147 = arith.addf %144, %146 : vector<2x32xf32>
    %148 = vector.extract_strided_slice %48 {offsets = [6, 0], sizes = [2, 96], strides = [1, 1]} : vector<16x96xf32> to vector<2x96xf32>
    %cst_35 = arith.constant dense<0.000000e+00> : vector<2x96xf32>
    %149 = tpu.matmul %147, %49, %cst_35 {dimension_numbers = #tpu.dot_dimension_numbers<[1], [0], [0], [1], [0, 0, 1, 1], [], []>} : vector<2x32xf32>, vector<32x96xf32>, vector<2x96xf32> -> vector<2x96xf32>
    %150 = arith.addf %148, %149 : vector<2x96xf32>
    %151 = vector.extract_strided_slice %150 {offsets = [0, 0], sizes = [2, 32], strides = [1, 1]} : vector<2x96xf32> to vector<2x32xf32>
    %152 = math.tanh %151 : vector<2x32xf32>
    %153 = vector.extract_strided_slice %150 {offsets = [0, 32], sizes = [2, 64], strides = [1, 1]} : vector<2x96xf32> to vector<2x64xf32>
    %154 = arith.negf %153 : vector<2x64xf32>
    %155 = math.exp %154 : vector<2x64xf32>
    %cst_36 = arith.constant 1.000000e+00 : f32
    %156 = vector.broadcast %cst_36 : f32 to vector<2x64xf32>
    %157 = arith.addf %156, %155 : vector<2x64xf32>
    %158 = arith.divf %156, %157 : vector<2x64xf32>
    %159 = vector.extract_strided_slice %158 {offsets = [0, 0], sizes = [2, 32], strides = [1, 1]} : vector<2x64xf32> to vector<2x32xf32>
    %160 = arith.mulf %152, %159 : vector<2x32xf32>
    %161 = vector.extract_strided_slice %158 {offsets = [0, 32], sizes = [2, 32], strides = [1, 1]} : vector<2x64xf32> to vector<2x32xf32>
    %162 = arith.mulf %147, %161 : vector<2x32xf32>
    %163 = arith.addf %160, %162 : vector<2x32xf32>
    %cst_37 = arith.constant dense<0.000000e+00> : vector<2x96xf32>
    %164 = tpu.matmul %163, %50, %cst_37 {dimension_numbers = #tpu.dot_dimension_numbers<[1], [0], [0], [1], [0, 0, 1, 1], [], []>} : vector<2x32xf32>, vector<32x96xf32>, vector<2x96xf32> -> vector<2x96xf32>
    %165 = arith.addf %164, %53 : vector<2x96xf32>
    %166 = vector.extract_strided_slice %165 {offsets = [0, 0], sizes = [2, 32], strides = [1, 1]} : vector<2x96xf32> to vector<2x32xf32>
    %167 = math.tanh %166 : vector<2x32xf32>
    %168 = vector.extract_strided_slice %165 {offsets = [0, 32], sizes = [2, 64], strides = [1, 1]} : vector<2x96xf32> to vector<2x64xf32>
    %169 = arith.negf %168 : vector<2x64xf32>
    %170 = math.exp %169 : vector<2x64xf32>
    %cst_38 = arith.constant 1.000000e+00 : f32
    %171 = vector.broadcast %cst_38 : f32 to vector<2x64xf32>
    %172 = arith.addf %171, %170 : vector<2x64xf32>
    %173 = arith.divf %171, %172 : vector<2x64xf32>
    %174 = vector.extract_strided_slice %173 {offsets = [0, 0], sizes = [2, 32], strides = [1, 1]} : vector<2x64xf32> to vector<2x32xf32>
    %175 = arith.mulf %167, %174 : vector<2x32xf32>
    %176 = vector.extract_strided_slice %173 {offsets = [0, 32], sizes = [2, 32], strides = [1, 1]} : vector<2x64xf32> to vector<2x32xf32>
    %177 = arith.mulf %163, %176 : vector<2x32xf32>
    %178 = arith.addf %175, %177 : vector<2x32xf32>
    %179 = vector.extract_strided_slice %48 {offsets = [8, 0], sizes = [2, 96], strides = [1, 1]} : vector<16x96xf32> to vector<2x96xf32>
    %cst_39 = arith.constant dense<0.000000e+00> : vector<2x96xf32>
    %180 = tpu.matmul %178, %49, %cst_39 {dimension_numbers = #tpu.dot_dimension_numbers<[1], [0], [0], [1], [0, 0, 1, 1], [], []>} : vector<2x32xf32>, vector<32x96xf32>, vector<2x96xf32> -> vector<2x96xf32>
    %181 = arith.addf %179, %180 : vector<2x96xf32>
    %182 = vector.extract_strided_slice %181 {offsets = [0, 0], sizes = [2, 32], strides = [1, 1]} : vector<2x96xf32> to vector<2x32xf32>
    %183 = math.tanh %182 : vector<2x32xf32>
    %184 = vector.extract_strided_slice %181 {offsets = [0, 32], sizes = [2, 64], strides = [1, 1]} : vector<2x96xf32> to vector<2x64xf32>
    %185 = arith.negf %184 : vector<2x64xf32>
    %186 = math.exp %185 : vector<2x64xf32>
    %cst_40 = arith.constant 1.000000e+00 : f32
    %187 = vector.broadcast %cst_40 : f32 to vector<2x64xf32>
    %188 = arith.addf %187, %186 : vector<2x64xf32>
    %189 = arith.divf %187, %188 : vector<2x64xf32>
    %190 = vector.extract_strided_slice %189 {offsets = [0, 0], sizes = [2, 32], strides = [1, 1]} : vector<2x64xf32> to vector<2x32xf32>
    %191 = arith.mulf %183, %190 : vector<2x32xf32>
    %192 = vector.extract_strided_slice %189 {offsets = [0, 32], sizes = [2, 32], strides = [1, 1]} : vector<2x64xf32> to vector<2x32xf32>
    %193 = arith.mulf %178, %192 : vector<2x32xf32>
    %194 = arith.addf %191, %193 : vector<2x32xf32>
    %cst_41 = arith.constant dense<0.000000e+00> : vector<2x96xf32>
    %195 = tpu.matmul %194, %50, %cst_41 {dimension_numbers = #tpu.dot_dimension_numbers<[1], [0], [0], [1], [0, 0, 1, 1], [], []>} : vector<2x32xf32>, vector<32x96xf32>, vector<2x96xf32> -> vector<2x96xf32>
    %196 = arith.addf %195, %53 : vector<2x96xf32>
    %197 = vector.extract_strided_slice %196 {offsets = [0, 0], sizes = [2, 32], strides = [1, 1]} : vector<2x96xf32> to vector<2x32xf32>
    %198 = math.tanh %197 : vector<2x32xf32>
    %199 = vector.extract_strided_slice %196 {offsets = [0, 32], sizes = [2, 64], strides = [1, 1]} : vector<2x96xf32> to vector<2x64xf32>
    %200 = arith.negf %199 : vector<2x64xf32>
    %201 = math.exp %200 : vector<2x64xf32>
    %cst_42 = arith.constant 1.000000e+00 : f32
    %202 = vector.broadcast %cst_42 : f32 to vector<2x64xf32>
    %203 = arith.addf %202, %201 : vector<2x64xf32>
    %204 = arith.divf %202, %203 : vector<2x64xf32>
    %205 = vector.extract_strided_slice %204 {offsets = [0, 0], sizes = [2, 32], strides = [1, 1]} : vector<2x64xf32> to vector<2x32xf32>
    %206 = arith.mulf %198, %205 : vector<2x32xf32>
    %207 = vector.extract_strided_slice %204 {offsets = [0, 32], sizes = [2, 32], strides = [1, 1]} : vector<2x64xf32> to vector<2x32xf32>
    %208 = arith.mulf %194, %207 : vector<2x32xf32>
    %209 = arith.addf %206, %208 : vector<2x32xf32>
    %210 = vector.extract_strided_slice %48 {offsets = [10, 0], sizes = [2, 96], strides = [1, 1]} : vector<16x96xf32> to vector<2x96xf32>
    %cst_43 = arith.constant dense<0.000000e+00> : vector<2x96xf32>
    %211 = tpu.matmul %209, %49, %cst_43 {dimension_numbers = #tpu.dot_dimension_numbers<[1], [0], [0], [1], [0, 0, 1, 1], [], []>} : vector<2x32xf32>, vector<32x96xf32>, vector<2x96xf32> -> vector<2x96xf32>
    %212 = arith.addf %210, %211 : vector<2x96xf32>
    %213 = vector.extract_strided_slice %212 {offsets = [0, 0], sizes = [2, 32], strides = [1, 1]} : vector<2x96xf32> to vector<2x32xf32>
    %214 = math.tanh %213 : vector<2x32xf32>
    %215 = vector.extract_strided_slice %212 {offsets = [0, 32], sizes = [2, 64], strides = [1, 1]} : vector<2x96xf32> to vector<2x64xf32>
    %216 = arith.negf %215 : vector<2x64xf32>
    %217 = math.exp %216 : vector<2x64xf32>
    %cst_44 = arith.constant 1.000000e+00 : f32
    %218 = vector.broadcast %cst_44 : f32 to vector<2x64xf32>
    %219 = arith.addf %218, %217 : vector<2x64xf32>
    %220 = arith.divf %218, %219 : vector<2x64xf32>
    %221 = vector.extract_strided_slice %220 {offsets = [0, 0], sizes = [2, 32], strides = [1, 1]} : vector<2x64xf32> to vector<2x32xf32>
    %222 = arith.mulf %214, %221 : vector<2x32xf32>
    %223 = vector.extract_strided_slice %220 {offsets = [0, 32], sizes = [2, 32], strides = [1, 1]} : vector<2x64xf32> to vector<2x32xf32>
    %224 = arith.mulf %209, %223 : vector<2x32xf32>
    %225 = arith.addf %222, %224 : vector<2x32xf32>
    %cst_45 = arith.constant dense<0.000000e+00> : vector<2x96xf32>
    %226 = tpu.matmul %225, %50, %cst_45 {dimension_numbers = #tpu.dot_dimension_numbers<[1], [0], [0], [1], [0, 0, 1, 1], [], []>} : vector<2x32xf32>, vector<32x96xf32>, vector<2x96xf32> -> vector<2x96xf32>
    %227 = arith.addf %226, %53 : vector<2x96xf32>
    %228 = vector.extract_strided_slice %227 {offsets = [0, 0], sizes = [2, 32], strides = [1, 1]} : vector<2x96xf32> to vector<2x32xf32>
    %229 = math.tanh %228 : vector<2x32xf32>
    %230 = vector.extract_strided_slice %227 {offsets = [0, 32], sizes = [2, 64], strides = [1, 1]} : vector<2x96xf32> to vector<2x64xf32>
    %231 = arith.negf %230 : vector<2x64xf32>
    %232 = math.exp %231 : vector<2x64xf32>
    %cst_46 = arith.constant 1.000000e+00 : f32
    %233 = vector.broadcast %cst_46 : f32 to vector<2x64xf32>
    %234 = arith.addf %233, %232 : vector<2x64xf32>
    %235 = arith.divf %233, %234 : vector<2x64xf32>
    %236 = vector.extract_strided_slice %235 {offsets = [0, 0], sizes = [2, 32], strides = [1, 1]} : vector<2x64xf32> to vector<2x32xf32>
    %237 = arith.mulf %229, %236 : vector<2x32xf32>
    %238 = vector.extract_strided_slice %235 {offsets = [0, 32], sizes = [2, 32], strides = [1, 1]} : vector<2x64xf32> to vector<2x32xf32>
    %239 = arith.mulf %225, %238 : vector<2x32xf32>
    %240 = arith.addf %237, %239 : vector<2x32xf32>
    %241 = vector.extract_strided_slice %48 {offsets = [12, 0], sizes = [2, 96], strides = [1, 1]} : vector<16x96xf32> to vector<2x96xf32>
    %cst_47 = arith.constant dense<0.000000e+00> : vector<2x96xf32>
    %242 = tpu.matmul %240, %49, %cst_47 {dimension_numbers = #tpu.dot_dimension_numbers<[1], [0], [0], [1], [0, 0, 1, 1], [], []>} : vector<2x32xf32>, vector<32x96xf32>, vector<2x96xf32> -> vector<2x96xf32>
    %243 = arith.addf %241, %242 : vector<2x96xf32>
    %244 = vector.extract_strided_slice %243 {offsets = [0, 0], sizes = [2, 32], strides = [1, 1]} : vector<2x96xf32> to vector<2x32xf32>
    %245 = math.tanh %244 : vector<2x32xf32>
    %246 = vector.extract_strided_slice %243 {offsets = [0, 32], sizes = [2, 64], strides = [1, 1]} : vector<2x96xf32> to vector<2x64xf32>
    %247 = arith.negf %246 : vector<2x64xf32>
    %248 = math.exp %247 : vector<2x64xf32>
    %cst_48 = arith.constant 1.000000e+00 : f32
    %249 = vector.broadcast %cst_48 : f32 to vector<2x64xf32>
    %250 = arith.addf %249, %248 : vector<2x64xf32>
    %251 = arith.divf %249, %250 : vector<2x64xf32>
    %252 = vector.extract_strided_slice %251 {offsets = [0, 0], sizes = [2, 32], strides = [1, 1]} : vector<2x64xf32> to vector<2x32xf32>
    %253 = arith.mulf %245, %252 : vector<2x32xf32>
    %254 = vector.extract_strided_slice %251 {offsets = [0, 32], sizes = [2, 32], strides = [1, 1]} : vector<2x64xf32> to vector<2x32xf32>
    %255 = arith.mulf %240, %254 : vector<2x32xf32>
    %256 = arith.addf %253, %255 : vector<2x32xf32>
    %cst_49 = arith.constant dense<0.000000e+00> : vector<2x96xf32>
    %257 = tpu.matmul %256, %50, %cst_49 {dimension_numbers = #tpu.dot_dimension_numbers<[1], [0], [0], [1], [0, 0, 1, 1], [], []>} : vector<2x32xf32>, vector<32x96xf32>, vector<2x96xf32> -> vector<2x96xf32>
    %258 = arith.addf %257, %53 : vector<2x96xf32>
    %259 = vector.extract_strided_slice %258 {offsets = [0, 0], sizes = [2, 32], strides = [1, 1]} : vector<2x96xf32> to vector<2x32xf32>
    %260 = math.tanh %259 : vector<2x32xf32>
    %261 = vector.extract_strided_slice %258 {offsets = [0, 32], sizes = [2, 64], strides = [1, 1]} : vector<2x96xf32> to vector<2x64xf32>
    %262 = arith.negf %261 : vector<2x64xf32>
    %263 = math.exp %262 : vector<2x64xf32>
    %cst_50 = arith.constant 1.000000e+00 : f32
    %264 = vector.broadcast %cst_50 : f32 to vector<2x64xf32>
    %265 = arith.addf %264, %263 : vector<2x64xf32>
    %266 = arith.divf %264, %265 : vector<2x64xf32>
    %267 = vector.extract_strided_slice %266 {offsets = [0, 0], sizes = [2, 32], strides = [1, 1]} : vector<2x64xf32> to vector<2x32xf32>
    %268 = arith.mulf %260, %267 : vector<2x32xf32>
    %269 = vector.extract_strided_slice %266 {offsets = [0, 32], sizes = [2, 32], strides = [1, 1]} : vector<2x64xf32> to vector<2x32xf32>
    %270 = arith.mulf %256, %269 : vector<2x32xf32>
    %271 = arith.addf %268, %270 : vector<2x32xf32>
    %272 = vector.extract_strided_slice %48 {offsets = [14, 0], sizes = [2, 96], strides = [1, 1]} : vector<16x96xf32> to vector<2x96xf32>
    %cst_51 = arith.constant dense<0.000000e+00> : vector<2x96xf32>
    %273 = tpu.matmul %271, %49, %cst_51 {dimension_numbers = #tpu.dot_dimension_numbers<[1], [0], [0], [1], [0, 0, 1, 1], [], []>} : vector<2x32xf32>, vector<32x96xf32>, vector<2x96xf32> -> vector<2x96xf32>
    %274 = arith.addf %272, %273 : vector<2x96xf32>
    %275 = vector.extract_strided_slice %274 {offsets = [0, 0], sizes = [2, 32], strides = [1, 1]} : vector<2x96xf32> to vector<2x32xf32>
    %276 = math.tanh %275 : vector<2x32xf32>
    %277 = vector.extract_strided_slice %274 {offsets = [0, 32], sizes = [2, 64], strides = [1, 1]} : vector<2x96xf32> to vector<2x64xf32>
    %278 = arith.negf %277 : vector<2x64xf32>
    %279 = math.exp %278 : vector<2x64xf32>
    %cst_52 = arith.constant 1.000000e+00 : f32
    %280 = vector.broadcast %cst_52 : f32 to vector<2x64xf32>
    %281 = arith.addf %280, %279 : vector<2x64xf32>
    %282 = arith.divf %280, %281 : vector<2x64xf32>
    %283 = vector.extract_strided_slice %282 {offsets = [0, 0], sizes = [2, 32], strides = [1, 1]} : vector<2x64xf32> to vector<2x32xf32>
    %284 = arith.mulf %276, %283 : vector<2x32xf32>
    %285 = vector.extract_strided_slice %282 {offsets = [0, 32], sizes = [2, 32], strides = [1, 1]} : vector<2x64xf32> to vector<2x32xf32>
    %286 = arith.mulf %271, %285 : vector<2x32xf32>
    %287 = arith.addf %284, %286 : vector<2x32xf32>
    %cst_53 = arith.constant dense<0.000000e+00> : vector<2x96xf32>
    %288 = tpu.matmul %287, %50, %cst_53 {dimension_numbers = #tpu.dot_dimension_numbers<[1], [0], [0], [1], [0, 0, 1, 1], [], []>} : vector<2x32xf32>, vector<32x96xf32>, vector<2x96xf32> -> vector<2x96xf32>
    %289 = arith.addf %288, %53 : vector<2x96xf32>
    %290 = vector.extract_strided_slice %289 {offsets = [0, 0], sizes = [2, 32], strides = [1, 1]} : vector<2x96xf32> to vector<2x32xf32>
    %291 = math.tanh %290 : vector<2x32xf32>
    %292 = vector.extract_strided_slice %289 {offsets = [0, 32], sizes = [2, 64], strides = [1, 1]} : vector<2x96xf32> to vector<2x64xf32>
    %293 = arith.negf %292 : vector<2x64xf32>
    %294 = math.exp %293 : vector<2x64xf32>
    %cst_54 = arith.constant 1.000000e+00 : f32
    %295 = vector.broadcast %cst_54 : f32 to vector<2x64xf32>
    %296 = arith.addf %295, %294 : vector<2x64xf32>
    %297 = arith.divf %295, %296 : vector<2x64xf32>
    %298 = vector.extract_strided_slice %297 {offsets = [0, 0], sizes = [2, 32], strides = [1, 1]} : vector<2x64xf32> to vector<2x32xf32>
    %299 = arith.mulf %291, %298 : vector<2x32xf32>
    %300 = vector.extract_strided_slice %297 {offsets = [0, 32], sizes = [2, 32], strides = [1, 1]} : vector<2x64xf32> to vector<2x32xf32>
    %301 = arith.mulf %287, %300 : vector<2x32xf32>
    %302 = arith.addf %299, %301 : vector<2x32xf32>
    %c0_55 = arith.constant 0 : index
    %c0_56 = arith.constant 0 : index
    %303 = vector.load %arg9[%c0_55, %c0_56] : memref<2x32xf32, #tpu.memory_space<vmem>>, vector<2x32xf32>
    tpu.vector_store %arg9[%c0_55, %c0_56], %302 {strides = array<i32>} : memref<2x32xf32, #tpu.memory_space<vmem>>, vector<2x32xf32>,
    %304 = tpu.concatenate %85, %116, %147, %178, %209, %240, %271, %302 in 0 : vector<2x32xf32>, vector<2x32xf32>, vector<2x32xf32>, vector<2x32xf32>, vector<2x32xf32>, vector<2x32xf32>, vector<2x32xf32>, vector<2x32xf32> -> vector<16x32xf32>
    %c0_57 = arith.constant 0 : index
    %c0_58 = arith.constant 0 : index
    %305 = vector.load %arg6[%c0_57, %c0_58] : memref<32x128xf32, #tpu.memory_space<vmem>>, vector<32x128xf32>
    %cst_59 = arith.constant dense<0.000000e+00> : vector<16x128xf32>
    %306 = tpu.matmul %304, %305, %cst_59 {dimension_numbers = #tpu.dot_dimension_numbers<[1], [0], [0], [1], [0, 0, 1, 1], [], []>} : vector<16x32xf32>, vector<32x128xf32>, vector<16x128xf32> -> vector<16x128xf32>
    %c0_60 = arith.constant 0 : index
    %c0_61 = arith.constant 0 : index
    %307 = vector.load %arg7[%c0_60, %c0_61] : memref<1x128xf32, #tpu.memory_space<vmem>>, vector<1x128xf32>
    %308 = vector.broadcast %307 : vector<1x128xf32> to vector<16x128xf32>
    %309 = arith.addf %306, %308 : vector<16x128xf32>
    %c0_62 = arith.constant 0 : index
    %c0_63 = arith.constant 0 : index
    %310 = vector.load %arg8[%c0_62, %c0_63] : memref<16x128xf32, #tpu.memory_space<vmem>>, vector<16x128xf32>
    tpu.vector_store %arg8[%c0_62, %c0_63], %309 {strides = array<i32>} : memref<16x128xf32, #tpu.memory_space<vmem>>, vector<16x128xf32>,
    return
  }
}

</mosaic_0001>

<bundles_post_ra>
// kernel: rhn_forward.1
= control target key start
LH: loop header
LB: loop body
LE: loop exit
PB: predicated region body
PF: predicated region fallthrough
CT: control target
= control target key end

     0   :  { %15 = vsyncpa [#allocation4], 0  ;;  %s2867_s0 = inlined_call_operand.vmem [shape: s32[16], index: 0, kind: input, shape index: {}]   ;;  %s2868_s1 = inlined_call_operand.vmem [shape: f32[128,96], index: 1, kind: input, shape index: {}]   ;;  %s2869_s2 = inlined_call_operand.vmem [shape: f32[2,32], index: 2, kind: input, shape index: {}]   ;;  %s2870_s3 = inlined_call_operand.vmem [shape: f32[32,96], index: 3, kind: input, shape index: {}]   ;;  %s2871_s4 = inlined_call_operand.vmem [shape: f32[32,96], index: 4, kind: input, shape index: {}]   ;;  %s2872_s5 = inlined_call_operand.vmem [shape: f32[1,96], index: 5, kind: input, shape index: {}]   ;;  %s2873_s6 = inlined_call_operand.vmem [shape: f32[32,128], index: 6, kind: input, shape index: {}]   ;;  %s2874_s7 = inlined_call_operand.vmem [shape: f32[1,128], index: 7, kind: input, shape index: {}]   ;;  %s2875_s8 = inlined_call_operand.hbm [shape: f32[16,128], index: 8, kind: output, shape index: {0}]   ;;  %s2876_s9 = inlined_call_operand.hbm [shape: f32[2,32], index: 9, kind: output, shape index: {1}]  }
   0x1   :  { %16 = vsyncpa [#allocation3], 0 }
   0x2   :  { %17 = vsyncpa [#allocation7], 0  ;;  %s24_s11 = sshll.u32 %s2867_s0, 4  ;;  %s25_s11 = int_to_ptr.vmem [resolvable:$true] %s24_s11 }
   0x3   :  { %s2390_s12 = scalar_lea.vmem %s25_s11, 16  ;;  %p2395_p1 = scmp.lt.s32.totalorder %s25_s11, %s25_s11 }
   0x4   :  { %p2391_p0 = scmp.ne.s32.totalorder %s25_s11, %s2390_s12  ;;  %p2396_p2 = scmp.lt.s32.totalorder %s2390_s12, %s2390_s12 }
   0x6   :  { %p2397_p3 = por %p2396_p2, %p2395_p1 }
   0x8   :  { %p2398_p4 = pnand %p2397_p3, %p2391_p0 }
   0xa   :  { %2401 = shalt.err (!%p2398_p4)
}
   0xb   :  { %s2452_s13 = smov [#allocation2]  }
   0xc   :  { %27 = dma.vmem_to_smem %s25_s11, 16, %s2452_s13, [#allocation4]  }
   0xd   :  { %2446 = dma.done.wait [#allocation4], 16  }
   0xe   :  { %2447 = vsyncadd [#allocation4], 4294967280 }
   0xf   :  { %45 = sfence }
  0x10   :  { %v157_v0 = vld [vmem:[%s2870_s3] sm:$0xff]  ;;  %v158_v1 = vld [vmem:[%s2870_s3 + $0x8] sm:$0xff]  ;;  %v159_v2 = vld [vmem:[%s2870_s3 + $0x10] sm:$0xff]  ;;  %v2453_v3 = vmov 0.0|0.0   ;;  %vm2454_vm0 = vmmov 0   ;;  %v2455_v6 = vmov 0.0  }
  0x11   :  { %2180 = vmatprep.subr.bf16.mxu0 %v2453_v3  ;;  %v2525_v4 = vpack.c.bf16 %v158_v1, %v157_v0  ;;  %v160_v5 = vld [vmem:[%s2870_s3 + $0x18] sm:$0xff]  ;;  %2001 = vmatprep.mubr.msk.f32.mxu0 %vm2454_vm0, %v2455_v6  ;;  %v2543_v8 = vld [vmem:[%s2869_s2] sm:$0x3]  ;;  %vm173_vm1 = vcmask 261120   ;;  %s1856_s22 = sld [smem:[#allocation2 + $0x1]]  ;;  %s1857_s2 = sld [smem:[#allocation2 + $0x2]] }
  0x12   :  { %2186 = vmatprep.subr.bf16.mxu1 %v2453_v3  ;;  %2012 = vmatprep.mubr.msk.f32.mxu1 %vm2454_vm0, %v2455_v6  ;;  %v2536_v7 = vpack.c.bf16 %v160_v5, %v159_v2  ;;  %s46_s23 = sld [smem:[#allocation2]]  ;;  %s1858_s24 = sld [smem:[#allocation2 + $0x3]]  ;;  %vm136_vm2 = vcmask 1040384   ;;  %vm138_vm3 = vcmask 1041408   ;;  %vm140_vm4 = vcmask 1042432   ;;  %v161_v35 = vld [vmem:[%s2871_s4] sm:$0xff] }
  0x13   :  { %2182 = vmatpush3.bf16.msra.mxu0 %v2525_v4  ;;  %s1859_s28 = sld [smem:[#allocation2 + $0x4]]  ;;  %s1860_s14 = sld [smem:[#allocation2 + $0x5]]  ;;  %vm142_vm5 = vcmask 1043456   ;;  %vm144_vm6 = vcmask 1044480   ;;  %vm146_vm7 = vcmask 1045504   ;;  %vm148_vm8 = vcmask 1046528  }
  0x14   :  { %2183 = vmatprep.subr.bf16.mxu0 %v2453_v3  ;;  %s1861_s0 = sld [smem:[#allocation2 + $0x6]]  ;;  %s1862_s21 = sld [smem:[#allocation2 + $0x7]]  ;;  %v162_v36 = vld [vmem:[%s2871_s4 + $0x8] sm:$0xff]  ;;  %v163_v40 = vld [vmem:[%s2871_s4 + $0x10] sm:$0xff]  ;;  %v164_v41 = vld [vmem:[%s2871_s4 + $0x18] sm:$0xff]  ;;  %vm1694_vm9 = vcmask 254976  }
  0x15   :  { %v2594_v38 = vpack.c.bf16 %v162_v36, %v161_v35  ;;  %v2604_v42 = vpack.c.bf16 %v164_v41, %v163_v40  ;;  %s2456_s16 = smov 96   ;;  %v2621_v50 = vld [vmem:[%s2872_s5] ss:$0 sm:$0xff]  ;;  %s1864_s5 = sld [smem:[#allocation2 + $0x9]] }
  0x16   :  { %s1865_s18 = sld [smem:[#allocation2 + $0xa]]  ;;  %s1863_s19 = sld [smem:[#allocation2 + $0x8]] }
  0x17   :  { %2185 = vmatpush3.bf16.msra.mxu0 %v2536_v7  ;;  %s50_s27 = scalar_lea.vmem %s2868_s1, %s1856_s22  ;;  %s53_s10 = scalar_lea.vmem %s2868_s1, %s1857_s2  ;;  %2188 = vmatpush3.bf16.msra.mxu1 %v2594_v38 }
  0x18   :  { %2192 = vmatprep.subr.bf16.mxu0 %v2453_v3  ;;  %v51_v9 = vld [vmem:[%s50_s27] sm:$0x1]  ;;  %s47_s13 = scalar_lea.vmem %s2868_s1, %s46_s23  ;;  %s56_s17 = scalar_lea.vmem %s2868_s1, %s1858_s24  ;;  %2189 = vmatprep.subr.bf16.mxu1 %v2453_v3 }
  0x19   :  { %v54_v10 = vld [vmem:[%s53_s10] sm:$0x1]  ;;  %v95_v11 = vrot.slane %v51_v9, 7  ;;  %s59_s20 = scalar_lea.vmem %s2868_s1, %s1859_s28  ;;  %s62_s2 = scalar_lea.vmem %s2868_s1, %s1860_s14 }
  0x1a   :  { %2002 = vmatmul.mubr.msk.f32.vlgmr.msra.gmra.mrb[0].mxu0 %vm173_vm1, %v2543_v8  ;;  %v48_v12 = vld [vmem:[%s47_s13] sm:$0x1]  ;;  %v98_v14 = vrot.slane %v54_v10, 6  ;;  %s65_s25 = scalar_lea.vmem %s2868_s1, %s1861_s0  ;;  %s68_s28 = scalar_lea.vmem %s2868_s1, %s1862_s21 }
  0x1b   :  { %2194 = vmatpush3.bf16.msra.mxu0 %v2525_v4  ;;  %2023 = vmatprep.mubr.msk.f32.mxu0 %vm2454_vm0, %v2455_v6  ;;  %v57_v13 = vld [vmem:[%s56_s17] sm:$0x1]  ;;  %v137_v15 = vsel %vm136_vm2, %v48_v12, %v95_v11  ;;  %s2457_s17 = smov 64   ;;  %s74_s22 = scalar_lea.vmem %s2868_s1, %s1864_s5 }
  0x1c   :  { %2195 = vmatprep.subr.bf16.mxu0 %v2453_v3  ;;  %v60_v16 = vld [vmem:[%s59_s20] sm:$0x1]  ;;  %v101_v17 = vrot.slane %v57_v13, 5  ;;  %v139_v18 = vsel %vm138_vm3, %v137_v15, %v98_v14  ;;  %2191 = vmatpush3.bf16.msra.mxu1 %v2604_v42  ;;  %s1866_s20 = sld [smem:[#allocation2 + $0xb]]  ;;  %s1868_s29 = sld [smem:[#allocation2 + $0xd]] }
  0x1d   :  { %v63_v19 = vld [vmem:[%s62_s2] sm:$0x1]  ;;  %v104_v20 = vrot.slane %v60_v16, 4  ;;  %2198 = vmatprep.subr.bf16.mxu1 %v2453_v3  ;;  %s1867_s2 = sld [smem:[#allocation2 + $0xc]]  ;;  %s1869_s12 = sld [smem:[#allocation2 + $0xe]] }
  0x1e   :  { %v141_v21 = vsel %vm140_vm4, %v139_v18, %v101_v17  ;;  %v66_v22 = vld [vmem:[%s65_s25] sm:$0x1]  ;;  %v107_v23 = vrot.slane %v63_v19, 3  ;;  %s77_s25 = scalar_lea.vmem %s2868_s1, %s1865_s18  ;;  %s1870_s4 = sld [smem:[#allocation2 + $0xf]] }
  0x1f   :  { %2197 = vmatpush3.bf16.msra.mxu0 %v2536_v7  ;;  %v143_v24 = vsel %vm142_vm5, %v141_v21, %v104_v20  ;;  %v69_v25 = vld [vmem:[%s68_s28] sm:$0x1]  ;;  %v110_v26 = vrot.slane %v66_v22, 2  ;;  %s71_s28 = scalar_lea.vmem %s2868_s1, %s1863_s19 }
  0x20   :  { %2204 = vmatprep.subr.bf16.mxu0 %v2453_v3  ;;  %v145_v27 = vsel %vm144_vm6, %v143_v24, %v107_v23  ;;  %v113_v28 = vrot.slane %v69_v25, 1 }
  0x21   :  { %v147_v29 = vsel %vm146_vm7, %v145_v27, %v110_v26 }
  0x22   :  { %v2585_v30 = vsel %vm148_vm8, %v147_v29, %v113_v28  ;;  %s80_s11 = scalar_lea.vmem %s2868_s1, %s1866_s20  ;;  %s86_s18 = scalar_lea.vmem %s2868_s1, %s1868_s29 }
  0x23   :  { %s83_s15 = scalar_lea.vmem %s2868_s1, %s1867_s2  ;;  %s89_s21 = scalar_lea.vmem %s2868_s1, %s1869_s12 }
  0x24   :  { %s92_s2 = scalar_lea.vmem %s2868_s1, %s1870_s4 }
  0xed   :  { %v243_v31 = vpop.f32.mrb[0].mxu0 }
  0xee   :  { %v247_v32 = vadd.f32 %v243_v31, %v2585_v30  ;;  %v2003_v33 = vpop.f32.mrb[1].mxu0 }
  0xf0   :  { %v1873_v34 = vmul.f32 -1.442695, %v247_v32 }
  0xf2   :  { %2294 = vpow2.f32 %v1873_v34 }
  0xfc   :  { %v2295_v37 = vpop.eup %2294 }
  0xfd   :  { %v252_v39 = vadd.f32 1.0, %v2295_v37 }
  0xff   :  { %2296 = vrcp.f32 %v252_v39 }
 0x100   :  { %2298 = vtanh.f32 %v247_v32 }
 0x109   :  { %v2297_v43 = vpop.eup %2296 }
 0x10a   :  { %256 = vrot.lane.b32.xlu0 %v2297_v43, %s2456_s16  ;;  %v2299_v45 = vpop.eup %2298 }
 0x10e   :  { %260 = vrot.lane.b32.xlu0 %v2297_v43, %s2457_s17 }
 0x17c   :  { %v257_v44 = vpop.permute.xlu0 %256 }
 0x17d   :  { %v259_v47 = vmul.f32 %v2299_v45, %v257_v44 }
 0x180   :  { %v261_v46 = vpop.permute.xlu0 %260 }
 0x181   :  { %v263_v48 = vmul.f32 %v261_v46, %v2543_v8 }
 0x183   :  { %v264_v49 = vadd.f32 %v263_v48, %v259_v47 }
 0x185   :  { %2013 = vmatmul.mubr.msk.f32.vlgmr.msra.gmra.mrb[0].mxu1 %vm173_vm1, %v264_v49 }
 0x186   :  { %2200 = vmatpush3.bf16.msra.mxu1 %v2594_v38  ;;  %2034 = vmatprep.mubr.msk.f32.mxu1 %vm2454_vm0, %v2455_v6 }
 0x187   :  { %2201 = vmatprep.subr.bf16.mxu1 %v2453_v3 }
 0x18a   :  { %2203 = vmatpush3.bf16.msra.mxu1 %v2604_v42 }
 0x18b   :  { %2210 = vmatprep.subr.bf16.mxu1 %v2453_v3 }
 0x258   :  { %v334_v51 = vpop.f32.mrb[0].mxu1 }
 0x259   :  { %v335_v52 = vadd.f32 %v2621_v50, %v334_v51  ;;  %v2014_v53 = vpop.f32.mrb[1].mxu1 }
 0x25b   :  { %v1875_v54 = vmul.f32 -1.442695, %v335_v52 }
 0x25d   :  { %2300 = vpow2.f32 %v1875_v54 }
 0x267   :  { %v2301_v55 = vpop.eup %2300 }
 0x268   :  { %v342_v56 = vadd.f32 1.0, %v2301_v55 }
 0x26a   :  { %2302 = vrcp.f32 %v342_v56 }
 0x26b   :  { %2304 = vtanh.f32 %v335_v52 }
 0x274   :  { %v2303_v57 = vpop.eup %2302 }
 0x275   :  { %346 = vrot.lane.b32.xlu1 %v2303_v57, %s2456_s16  ;;  %v2305_v59 = vpop.eup %2304 }
 0x279   :  { %350 = vrot.lane.b32.xlu1 %v2303_v57, %s2457_s17 }
 0x2e7   :  { %v347_v58 = vpop.permute.xlu1 %346 }
 0x2e8   :  { %v349_v61 = vmul.f32 %v2305_v59, %v347_v58 }
 0x2eb   :  { %v351_v60 = vpop.permute.xlu1 %350 }
 0x2ec   :  { %v353_v62 = vmul.f32 %v351_v60, %v264_v49 }
 0x2ee   :  { %v2626_v63 = vadd.f32 %v353_v62, %v349_v61 }
 0x2f0   :  { %2024 = vmatmul.mubr.msk.f32.vlgmr.msra.gmra.mrb[2].mxu0 %vm173_vm1, %v2626_v63 }
 0x2f1   :  { %2206 = vmatpush3.bf16.msra.mxu0 %v2525_v4  ;;  %2045 = vmatprep.mubr.msk.f32.mxu0 %vm2454_vm0, %v2455_v6 }
 0x2f2   :  { %2207 = vmatprep.subr.bf16.mxu0 %v2453_v3 }
 0x2f5   :  { %2209 = vmatpush3.bf16.msra.mxu0 %v2536_v7 }
 0x2f6   :  { %2216 = vmatprep.subr.bf16.mxu0 %v2453_v3 }
 0x3c3   :  { %v424_v0 = vpop.f32.mrb[2].mxu0 }
 0x3c4   :  { %v429_v1 = vrot.slane %v424_v0, 6  ;;  %v2025_v2 = vpop.f32.mrb[3].mxu0 }
 0x3c6   :  { %v431_v5 = vadd.f32 %v429_v1, %v2585_v30 }
 0x3c8   :  { %v1877_v8 = vmul.f32 -1.442695, %v431_v5 }
 0x3ca   :  { %2306 = vpow2.f32 %v1877_v8 }
 0x3d4   :  { %v2307_v9 = vpop.eup %2306 }
 0x3d5   :  { %v436_v10 = vadd.f32 1.0, %v2307_v9 }
 0x3d7   :  { %2308 = vrcp.f32 %v436_v10 }
 0x3d8   :  { %2310 = vtanh.f32 %v431_v5 }
 0x3e1   :  { %v2309_v11 = vpop.eup %2308 }
 0x3e2   :  { %440 = vrot.lane.b32.xlu1 %v2309_v11, %s2456_s16  ;;  %v444_v12 = vrot.slane %v2309_v11, 2  ;;  %v2311_v16 = vpop.eup %2310 }
 0x3e4   :  { %445 = vrot.lane.b32.xlu0 %v444_v12, %s2457_s17 }
 0x454   :  { %v441_v13 = vpop.permute.xlu1 %440 }
 0x455   :  { %v443_v17 = vmul.f32 %v2311_v16, %v441_v13 }
 0x456   :  { %v446_v14 = vpop.permute.xlu0 %445 }
 0x457   :  { %v448_v15 = vmul.f32 %v446_v14, %v2626_v63 }
 0x459   :  { %v450_v18 = vrot.slane %v448_v15, 6 }
 0x45b   :  { %v452_v19 = vadd.f32 %v450_v18, %v443_v17 }
 0x45d   :  { %v454_v20 = vrot.slane %v452_v19, 2 }
 0x45f   :  { %2035 = vmatmul.mubr.msk.f32.vlgmr.msra.gmra.mrb[2].mxu1 %vm173_vm1, %v454_v20 }
 0x460   :  { %2212 = vmatpush3.bf16.msra.mxu1 %v2594_v38  ;;  %2056 = vmatprep.mubr.msk.f32.mxu1 %vm2454_vm0, %v2455_v6 }
 0x461   :  { %2213 = vmatprep.subr.bf16.mxu1 %v2453_v3 }
 0x464   :  { %2215 = vmatpush3.bf16.msra.mxu1 %v2604_v42 }
 0x465   :  { %2222 = vmatprep.subr.bf16.mxu1 %v2453_v3 }
 0x532   :  { %v523_v21 = vpop.f32.mrb[2].mxu1 }
 0x533   :  { %v524_v22 = vadd.f32 %v2621_v50, %v523_v21  ;;  %v2036_v23 = vpop.f32.mrb[3].mxu1 }
 0x535   :  { %v1879_v24 = vmul.f32 -1.442695, %v524_v22 }
 0x537   :  { %2312 = vpow2.f32 %v1879_v24 }
 0x541   :  { %v2313_v25 = vpop.eup %2312 }
 0x542   :  { %v531_v26 = vadd.f32 1.0, %v2313_v25 }
 0x544   :  { %2314 = vrcp.f32 %v531_v26 }
 0x545   :  { %2316 = vtanh.f32 %v524_v22 }
 0x54e   :  { %v2315_v27 = vpop.eup %2314 }
 0x54f   :  { %535 = vrot.lane.b32.xlu1 %v2315_v27, %s2456_s16  ;;  %v539_v28 = vrot.slane %v2315_v27, 6  ;;  %v2317_v33 = vpop.eup %2316 }
 0x551   :  { %540 = vrot.lane.b32.xlu0 %v539_v28, %s2457_s17 }
 0x5c1   :  { %v536_v29 = vpop.permute.xlu1 %535 }
 0x5c2   :  { %v538_v34 = vmul.f32 %v2317_v33, %v536_v29 }
 0x5c3   :  { %v541_v31 = vpop.permute.xlu0 %540 }
 0x5c4   :  { %v543_v32 = vmul.f32 %v541_v31, %v452_v19 }
 0x5c6   :  { %v545_v35 = vrot.slane %v543_v32, 2 }
 0x5c8   :  { %v2650_v36 = vadd.f32 %v545_v35, %v538_v34 }
 0x5ca   :  { %2046 = vmatmul.mubr.msk.f32.vlgmr.msra.gmra.mrb[4].mxu0 %vm173_vm1, %v2650_v36 }
 0x5cb   :  { %2218 = vmatpush3.bf16.msra.mxu0 %v2525_v4  ;;  %2067 = vmatprep.mubr.msk.f32.mxu0 %vm2454_vm0, %v2455_v6 }
 0x5cc   :  { %2219 = vmatprep.subr.bf16.mxu0 %v2453_v3 }
 0x5cf   :  { %2221 = vmatpush3.bf16.msra.mxu0 %v2536_v7 }
 0x5d0   :  { %2228 = vmatprep.subr.bf16.mxu0 %v2453_v3 }
 0x69d   :  { %v617_v37 = vpop.f32.mrb[4].mxu0 }
 0x69e   :  { %v622_v39 = vrot.slane %v617_v37, 4  ;;  %v2047_v40 = vpop.f32.mrb[5].mxu0 }
 0x6a0   :  { %v624_v41 = vadd.f32 %v622_v39, %v2585_v30 }
 0x6a2   :  { %v1881_v43 = vmul.f32 -1.442695, %v624_v41 }
 0x6a4   :  { %2318 = vpow2.f32 %v1881_v43 }
 0x6ae   :  { %v2319_v44 = vpop.eup %2318 }
 0x6af   :  { %v629_v45 = vadd.f32 1.0, %v2319_v44 }
 0x6b1   :  { %2320 = vrcp.f32 %v629_v45 }
 0x6b2   :  { %2322 = vtanh.f32 %v624_v41 }
 0x6bb   :  { %v2321_v46 = vpop.eup %2320 }
 0x6bc   :  { %633 = vrot.lane.b32.xlu1 %v2321_v46, %s2456_s16  ;;  %v637_v47 = vrot.slane %v2321_v46, 4  ;;  %v2323_v52 = vpop.eup %2322 }
 0x6be   :  { %638 = vrot.lane.b32.xlu0 %v637_v47, %s2457_s17 }
 0x72e   :  { %v634_v48 = vpop.permute.xlu1 %633 }
 0x72f   :  { %v636_v53 = vmul.f32 %v2323_v52, %v634_v48  ;;  %v75_v48 = vld [vmem:[%s74_s22] sm:$0x1] }
 0x730   :  { %v639_v49 = vpop.permute.xlu0 %638  ;;  %v72_v52 = vld [vmem:[%s71_s28] sm:$0x1] }
 0x731   :  { %v641_v51 = vmul.f32 %v639_v49, %v2650_v36  ;;  %v78_v49 = vld [vmem:[%s77_s25] sm:$0x1] }
 0x733   :  { %v643_v54 = vrot.slane %v641_v51, 4  ;;  %v116_v51 = vrot.slane %v75_v48, 7 }
 0x735   :  { %v645_v55 = vadd.f32 %v643_v54, %v636_v53  ;;  %v81_v53 = vld [vmem:[%s80_s11] sm:$0x1]  ;;  %v119_v54 = vrot.slane %v78_v49, 6 }
 0x737   :  { %v647_v56 = vrot.slane %v645_v55, 4 }
 0x739   :  { %2057 = vmatmul.mubr.msk.f32.vlgmr.msra.gmra.mrb[4].mxu1 %vm173_vm1, %v647_v56  ;;  %v84_v56 = vld [vmem:[%s83_s15] sm:$0x1] }
 0x73a   :  { %2224 = vmatpush3.bf16.msra.mxu1 %v2594_v38  ;;  %2078 = vmatprep.mubr.msk.f32.mxu1 %vm2454_vm0, %v2455_v6 }
 0x73b   :  { %2225 = vmatprep.subr.bf16.mxu1 %v2453_v3 }
 0x73e   :  { %2227 = vmatpush3.bf16.msra.mxu1 %v2604_v42 }
 0x73f   :  { %2234 = vmatprep.subr.bf16.mxu1 %v2453_v3 }
 0x80c   :  { %v716_v57 = vpop.f32.mrb[4].mxu1 }
 0x80d   :  { %v717_v58 = vadd.f32 %v2621_v50, %v716_v57  ;;  %v2058_v59 = vpop.f32.mrb[5].mxu1  ;;  %v122_v57 = vrot.slane %v81_v53, 5 }
 0x80e   :  { %v87_v59 = vld [vmem:[%s86_s18] sm:$0x1] }
 0x80f   :  { %v1883_v60 = vmul.f32 -1.442695, %v717_v58 }
 0x811   :  { %2324 = vpow2.f32 %v1883_v60  ;;  %v125_v60 = vrot.slane %v84_v56, 4 }
 0x81b   :  { %v2325_v61 = vpop.eup %2324 }
 0x81c   :  { %v724_v62 = vadd.f32 1.0, %v2325_v61 }
 0x81e   :  { %2326 = vrcp.f32 %v724_v62  ;;  %v90_v62 = vld [vmem:[%s89_s21] sm:$0x1] }
 0x81f   :  { %2328 = vtanh.f32 %v717_v58 }
 0x828   :  { %v2327_v0 = vpop.eup %2326 }
 0x829   :  { %728 = vrot.lane.b32.xlu1 %v2327_v0, %s2456_s16  ;;  %v732_v1 = vrot.slane %v2327_v0, 4  ;;  %v2329_v9 = vpop.eup %2328  ;;  %v128_v0 = vrot.slane %v87_v59, 3 }
 0x82b   :  { %733 = vrot.lane.b32.xlu0 %v732_v1, %s2457_s17 }
 0x89b   :  { %v729_v2 = vpop.permute.xlu1 %728 }
 0x89c   :  { %v731_v10 = vmul.f32 %v2329_v9, %v729_v2  ;;  %v93_v2 = vld [vmem:[%s92_s2] sm:$0x1] }
 0x89d   :  { %v734_v5 = vpop.permute.xlu0 %733  ;;  %v134_v9 = vrot.slane %v93_v2, 1 }
 0x89e   :  { %v736_v8 = vmul.f32 %v734_v5, %v645_v55  ;;  %v150_v55 = vsel %vm136_vm2, %v72_v52, %v116_v51  ;;  %v131_v5 = vrot.slane %v90_v62, 2 }
 0x89f   :  { %v151_v58 = vsel %vm138_vm3, %v150_v55, %v119_v54 }
 0x8a0   :  { %v738_v11 = vrot.slane %v736_v8, 4  ;;  %v152_v61 = vsel %vm140_vm4, %v151_v58, %v122_v57 }
 0x8a1   :  { %v153_v1 = vsel %vm142_vm5, %v152_v61, %v125_v60 }
 0x8a2   :  { %v2674_v12 = vadd.f32 %v738_v11, %v731_v10  ;;  %v154_v8 = vsel %vm144_vm6, %v153_v1, %v128_v0 }
 0x8a3   :  { %v155_v10 = vsel %vm146_vm7, %v154_v8, %v131_v5 }
 0x8a4   :  { %2068 = vmatmul.mubr.msk.f32.vlgmr.msra.gmra.mrb[6].mxu0 %vm173_vm1, %v2674_v12  ;;  %v2739_v11 = vsel %vm148_vm8, %v155_v10, %v134_v9 }
 0x8a5   :  { %2230 = vmatpush3.bf16.msra.mxu0 %v2525_v4  ;;  %2089 = vmatprep.mubr.msk.f32.mxu0 %vm2454_vm0, %v2455_v6 }
 0x8a6   :  { %2231 = vmatprep.subr.bf16.mxu0 %v2453_v3 }
 0x8a9   :  { %2233 = vmatpush3.bf16.msra.mxu0 %v2536_v7 }
 0x8aa   :  { %2240 = vmatprep.subr.bf16.mxu0 %v2453_v3 }
 0x977   :  { %v810_v13 = vpop.f32.mrb[6].mxu0 }
 0x978   :  { %v815_v14 = vrot.slane %v810_v13, 2  ;;  %v2069_v15 = vpop.f32.mrb[7].mxu0 }
 0x97a   :  { %v817_v16 = vadd.f32 %v815_v14, %v2585_v30 }
 0x97c   :  { %v1885_v17 = vmul.f32 -1.442695, %v817_v16 }
 0x97e   :  { %2330 = vpow2.f32 %v1885_v17 }
 0x988   :  { %v2331_v18 = vpop.eup %2330 }
 0x989   :  { %v822_v19 = vadd.f32 1.0, %v2331_v18 }
 0x98b   :  { %2332 = vrcp.f32 %v822_v19 }
 0x98c   :  { %2334 = vtanh.f32 %v817_v16 }
 0x995   :  { %v2333_v20 = vpop.eup %2332 }
 0x996   :  { %826 = vrot.lane.b32.xlu1 %v2333_v20, %s2456_s16  ;;  %v830_v21 = vrot.slane %v2333_v20, 6  ;;  %v2335_v25 = vpop.eup %2334 }
 0x998   :  { %831 = vrot.lane.b32.xlu0 %v830_v21, %s2457_s17 }
 0xa08   :  { %v827_v22 = vpop.permute.xlu1 %826 }
 0xa09   :  { %v829_v26 = vmul.f32 %v2335_v25, %v827_v22 }
 0xa0a   :  { %v832_v23 = vpop.permute.xlu0 %831 }
 0xa0b   :  { %v834_v24 = vmul.f32 %v832_v23, %v2674_v12 }
 0xa0d   :  { %v836_v27 = vrot.slane %v834_v24, 2 }
 0xa0f   :  { %v838_v30 = vadd.f32 %v836_v27, %v829_v26 }
 0xa11   :  { %v840_v28 = vrot.slane %v838_v30, 6 }
 0xa13   :  { %2079 = vmatmul.mubr.msk.f32.vlgmr.msra.gmra.mrb[6].mxu1 %vm173_vm1, %v840_v28 }
 0xa14   :  { %2236 = vmatpush3.bf16.msra.mxu1 %v2594_v38  ;;  %2100 = vmatprep.mubr.msk.f32.mxu1 %vm2454_vm0, %v2455_v6 }
 0xa15   :  { %2237 = vmatprep.subr.bf16.mxu1 %v2453_v3 }
 0xa18   :  { %2239 = vmatpush3.bf16.msra.mxu1 %v2604_v42 }
 0xa19   :  { %2246 = vmatprep.subr.bf16.mxu1 %v2453_v3 }
 0xae6   :  { %v909_v29 = vpop.f32.mrb[6].mxu1 }
 0xae7   :  { %v910_v31 = vadd.f32 %v2621_v50, %v909_v29  ;;  %v2080_v32 = vpop.f32.mrb[7].mxu1 }
 0xae9   :  { %v1887_v33 = vmul.f32 -1.442695, %v910_v31 }
 0xaeb   :  { %2336 = vpow2.f32 %v1887_v33 }
 0xaf5   :  { %v2337_v34 = vpop.eup %2336 }
 0xaf6   :  { %v917_v35 = vadd.f32 1.0, %v2337_v34 }
 0xaf8   :  { %2338 = vrcp.f32 %v917_v35 }
 0xaf9   :  { %2340 = vtanh.f32 %v910_v31 }
 0xb02   :  { %v2339_v37 = vpop.eup %2338 }
 0xb03   :  { %921 = vrot.lane.b32.xlu1 %v2339_v37, %s2456_s16  ;;  %v925_v39 = vrot.slane %v2339_v37, 2  ;;  %v2341_v44 = vpop.eup %2340 }
 0xb05   :  { %926 = vrot.lane.b32.xlu0 %v925_v39, %s2457_s17 }
 0xb75   :  { %v922_v40 = vpop.permute.xlu1 %921 }
 0xb76   :  { %v924_v45 = vmul.f32 %v2341_v44, %v922_v40 }
 0xb77   :  { %v927_v41 = vpop.permute.xlu0 %926 }
 0xb78   :  { %v929_v43 = vmul.f32 %v927_v41, %v838_v30 }
 0xb7a   :  { %v931_v46 = vrot.slane %v929_v43, 6 }
 0xb7c   :  { %v2698_v47 = vadd.f32 %v931_v46, %v924_v45 }
 0xb7e   :  { %2090 = vmatmul.mubr.msk.f32.vlgmr.msra.gmra.mrb[8].mxu0 %vm173_vm1, %v2698_v47 }
 0xb7f   :  { %2242 = vmatpush3.bf16.msra.mxu0 %v2525_v4  ;;  %2111 = vmatprep.mubr.msk.f32.mxu0 %vm2454_vm0, %v2455_v6 }
 0xb80   :  { %2243 = vmatprep.subr.bf16.mxu0 %v2453_v3 }
 0xb83   :  { %2245 = vmatpush3.bf16.msra.mxu0 %v2536_v7 }
 0xb84   :  { %2252 = vmatprep.subr.bf16.mxu0 %v2453_v3 }
 0xc51   :  { %v1003_v13 = vpop.f32.mrb[8].mxu0 }
 0xc52   :  { %v1007_v14 = vadd.f32 %v1003_v13, %v2739_v11  ;;  %v2091_v15 = vpop.f32.mrb[9].mxu0 }
 0xc54   :  { %v1889_v16 = vmul.f32 -1.442695, %v1007_v14 }
 0xc56   :  { %2342 = vpow2.f32 %v1889_v16 }
 0xc60   :  { %v2343_v17 = vpop.eup %2342 }
 0xc61   :  { %v1012_v18 = vadd.f32 1.0, %v2343_v17 }
 0xc63   :  { %2344 = vrcp.f32 %v1012_v18 }
 0xc64   :  { %2346 = vtanh.f32 %v1007_v14 }
 0xc6d   :  { %v2345_v19 = vpop.eup %2344 }
 0xc6e   :  { %1020 = vrot.lane.b32.xlu1 %v2345_v19, %s2457_s17  ;;  %1016 = vrot.lane.b32.xlu0 %v2345_v19, %s2456_s16  ;;  %v2347_v20 = vpop.eup %2346 }
 0xce0   :  { %v1021_v21 = vpop.permute.xlu1 %1020  ;;  %v1017_v22 = vpop.permute.xlu0 %1016 }
 0xce1   :  { %v1023_v23 = vmul.f32 %v1021_v21, %v2698_v47  ;;  %v1019_v24 = vmul.f32 %v2347_v20, %v1017_v22 }
 0xce3   :  { %v1024_v25 = vadd.f32 %v1023_v23, %v1019_v24 }
 0xce5   :  { %2101 = vmatmul.mubr.msk.f32.vlgmr.msra.gmra.mrb[8].mxu1 %vm173_vm1, %v1024_v25 }
 0xce6   :  { %2248 = vmatpush3.bf16.msra.mxu1 %v2594_v38  ;;  %2122 = vmatprep.mubr.msk.f32.mxu1 %vm2454_vm0, %v2455_v6 }
 0xce7   :  { %2249 = vmatprep.subr.bf16.mxu1 %v2453_v3 }
 0xcea   :  { %2251 = vmatpush3.bf16.msra.mxu1 %v2604_v42 }
 0xceb   :  { %2258 = vmatprep.subr.bf16.mxu1 %v2453_v3 }
 0xdb8   :  { %v1094_v26 = vpop.f32.mrb[8].mxu1 }
 0xdb9   :  { %v1095_v27 = vadd.f32 %v2621_v50, %v1094_v26  ;;  %v2102_v30 = vpop.f32.mrb[9].mxu1 }
 0xdbb   :  { %v1891_v28 = vmul.f32 -1.442695, %v1095_v27 }
 0xdbd   :  { %2348 = vpow2.f32 %v1891_v28 }
 0xdc7   :  { %v2349_v29 = vpop.eup %2348 }
 0xdc8   :  { %v1102_v31 = vadd.f32 1.0, %v2349_v29 }
 0xdca   :  { %2350 = vrcp.f32 %v1102_v31 }
 0xdcb   :  { %2352 = vtanh.f32 %v1095_v27 }
 0xdd4   :  { %v2351_v32 = vpop.eup %2350 }
 0xdd5   :  { %1110 = vrot.lane.b32.xlu1 %v2351_v32, %s2457_s17  ;;  %1106 = vrot.lane.b32.xlu0 %v2351_v32, %s2456_s16  ;;  %v2353_v33 = vpop.eup %2352 }
 0xe47   :  { %v1111_v34 = vpop.permute.xlu1 %1110  ;;  %v1107_v35 = vpop.permute.xlu0 %1106 }
 0xe48   :  { %v1113_v37 = vmul.f32 %v1111_v34, %v1024_v25  ;;  %v1109_v39 = vmul.f32 %v2353_v33, %v1107_v35 }
 0xe4a   :  { %v2755_v40 = vadd.f32 %v1113_v37, %v1109_v39 }
 0xe4c   :  { %2112 = vmatmul.mubr.msk.f32.vlgmr.msra.gmra.mrb[10].mxu0 %vm173_vm1, %v2755_v40 }
 0xe4d   :  { %2254 = vmatpush3.bf16.msra.mxu0 %v2525_v4  ;;  %2133 = vmatprep.mubr.msk.f32.mxu0 %vm2454_vm0, %v2455_v6 }
 0xe4e   :  { %2255 = vmatprep.subr.bf16.mxu0 %v2453_v3 }
 0xe51   :  { %2257 = vmatpush3.bf16.msra.mxu0 %v2536_v7 }
 0xe52   :  { %2264 = vmatprep.subr.bf16.mxu0 %v2453_v3 }
 0xf1f   :  { %v1184_v41 = vpop.f32.mrb[10].mxu0 }
 0xf20   :  { %v1189_v43 = vrot.slane %v1184_v41, 6  ;;  %v2113_v44 = vpop.f32.mrb[11].mxu0 }
 0xf22   :  { %v1191_v45 = vadd.f32 %v1189_v43, %v2739_v11 }
 0xf24   :  { %v1893_v46 = vmul.f32 -1.442695, %v1191_v45 }
 0xf26   :  { %2354 = vpow2.f32 %v1893_v46 }
 0xf30   :  { %v2355_v48 = vpop.eup %2354 }
 0xf31   :  { %v1196_v49 = vadd.f32 1.0, %v2355_v48  ;;  %v1698_v48 = vrot.slane %v2674_v12, 4 }
 0xf33   :  { %2356 = vrcp.f32 %v1196_v49  ;;  %v1700_v49 = vrot.slane %v2698_v47, 2 }
 0xf34   :  { %2358 = vtanh.f32 %v1191_v45 }
 0xf3d   :  { %v2357_v51 = vpop.eup %2356 }
 0xf3e   :  { %1200 = vrot.lane.b32.xlu1 %v2357_v51, %s2456_s16  ;;  %v1204_v52 = vrot.slane %v2357_v51, 2  ;;  %v2359_v56 = vpop.eup %2358 }
 0xf40   :  { %1205 = vrot.lane.b32.xlu0 %v1204_v52, %s2457_s17 }
 0xfb0   :  { %v1201_v53 = vpop.permute.xlu1 %1200 }
 0xfb1   :  { %v1203_v57 = vmul.f32 %v2359_v56, %v1201_v53 }
 0xfb2   :  { %v1206_v54 = vpop.permute.xlu0 %1205 }
 0xfb3   :  { %v1208_v55 = vmul.f32 %v1206_v54, %v2755_v40 }
 0xfb5   :  { %v1210_v58 = vrot.slane %v1208_v55, 6 }
 0xfb7   :  { %v1212_v59 = vadd.f32 %v1210_v58, %v1203_v57 }
 0xfb9   :  { %v1214_v60 = vrot.slane %v1212_v59, 2 }
 0xfbb   :  { %2123 = vmatmul.mubr.msk.f32.vlgmr.msra.gmra.mrb[10].mxu1 %vm173_vm1, %v1214_v60 }
 0xfbc   :  { %2260 = vmatpush3.bf16.msra.mxu1 %v2594_v38  ;;  %2144 = vmatprep.mubr.msk.f32.mxu1 %vm2454_vm0, %v2455_v6 }
 0xfbd   :  { %2261 = vmatprep.subr.bf16.mxu1 %v2453_v3 }
 0xfc0   :  { %2263 = vmatpush3.bf16.msra.mxu1 %v2604_v42 }
 0xfc1   :  { %2270 = vmatprep.subr.bf16.mxu1 %v2453_v3 }
0x108e   :  { %v1283_v61 = vpop.f32.mrb[10].mxu1 }
0x108f   :  { %v1284_v62 = vadd.f32 %v2621_v50, %v1283_v61  ;;  %v2124_v0 = vpop.f32.mrb[11].mxu1 }
0x1091   :  { %v1895_v1 = vmul.f32 -1.442695, %v1284_v62 }
0x1093   :  { %2360 = vpow2.f32 %v1895_v1 }
0x109d   :  { %v2361_v2 = vpop.eup %2360 }
0x109e   :  { %v1291_v5 = vadd.f32 1.0, %v2361_v2 }
0x10a0   :  { %2362 = vrcp.f32 %v1291_v5 }
0x10a1   :  { %2364 = vtanh.f32 %v1284_v62 }
0x10aa   :  { %v2363_v8 = vpop.eup %2362 }
0x10ab   :  { %1295 = vrot.lane.b32.xlu1 %v2363_v8, %s2456_s16  ;;  %v1299_v9 = vrot.slane %v2363_v8, 6  ;;  %v2365_v15 = vpop.eup %2364 }
0x10ad   :  { %1300 = vrot.lane.b32.xlu0 %v1299_v9, %s2457_s17 }
0x111d   :  { %v1296_v10 = vpop.permute.xlu1 %1295 }
0x111e   :  { %v1298_v16 = vmul.f32 %v2365_v15, %v1296_v10 }
0x111f   :  { %v1301_v13 = vpop.permute.xlu0 %1300 }
0x1120   :  { %v1303_v14 = vmul.f32 %v1301_v13, %v1212_v59 }
0x1122   :  { %v1305_v17 = vrot.slane %v1303_v14, 2 }
0x1124   :  { %v2779_v18 = vadd.f32 %v1305_v17, %v1298_v16 }
0x1126   :  { %2134 = vmatmul.mubr.msk.f32.vlgmr.msra.gmra.mrb[12].mxu0 %vm173_vm1, %v2779_v18 }
0x1127   :  { %2266 = vmatpush3.bf16.msra.mxu0 %v2525_v4  ;;  %2155 = vmatprep.mubr.msk.f32.mxu0 %vm2454_vm0, %v2455_v6 }
0x1128   :  { %2267 = vmatprep.subr.bf16.mxu0 %v2453_v3 }
0x112b   :  { %2269 = vmatpush3.bf16.msra.mxu0 %v2536_v7 }
0x11f9   :  { %v1377_v19 = vpop.f32.mrb[12].mxu0 }
0x11fa   :  { %v1382_v20 = vrot.slane %v1377_v19, 4  ;;  %v2135_v21 = vpop.f32.mrb[13].mxu0  ;;  %v1715_v19 = vld [vmem:[%s2873_s6] sm:$0xff] }
0x11fc   :  { %v1384_v22 = vadd.f32 %v1382_v20, %v2739_v11  ;;  %v1716_v20 = vld [vmem:[%s2873_s6 + $0x8] sm:$0xff] }
0x11fd   :  { %v2276_v21 = vpack.c.bf16 %v1716_v20, %v1715_v19 }
0x11fe   :  { %v1897_v23 = vmul.f32 -1.442695, %v1384_v22 }
0x11ff   :  { %2277 = vmatprep.subr.bf16.mxu0 %v2276_v21 }
0x1200   :  { %2366 = vpow2.f32 %v1897_v23 }
0x120a   :  { %v2367_v24 = vpop.eup %2366 }
0x120b   :  { %v1389_v25 = vadd.f32 1.0, %v2367_v24 }
0x120d   :  { %2368 = vrcp.f32 %v1389_v25 }
0x120e   :  { %2370 = vtanh.f32 %v1384_v22  ;;  %v1718_v22 = vld [vmem:[%s2873_s6 + $0x18] sm:$0xff] }
0x1217   :  { %v2369_v26 = vpop.eup %2368 }
0x1218   :  { %1393 = vrot.lane.b32.xlu1 %v2369_v26, %s2456_s16  ;;  %v1397_v4 = vrot.slane %v2369_v26, 4  ;;  %v2371_v28 = vpop.eup %2370 }
0x121a   :  { %1398 = vrot.lane.b32.xlu0 %v1397_v4, %s2457_s17 }
0x128a   :  { %v1394_v27 = vpop.permute.xlu1 %1393 }
0x128b   :  { %v1396_v29 = vmul.f32 %v2371_v28, %v1394_v27 }
0x128c   :  { %v1399_v30 = vpop.permute.xlu0 %1398 }
0x128d   :  { %v1401_v7 = vmul.f32 %v1399_v30, %v2779_v18 }
0x128f   :  { %v1403_v31 = vrot.slane %v1401_v7, 4  ;;  %v1702_v7 = vrot.slane %v2779_v18, 6 }
0x1291   :  { %v1405_v32 = vadd.f32 %v1403_v31, %v1396_v29 }
0x1293   :  { %v1407_v33 = vrot.slane %v1405_v32, 4 }
0x1295   :  { %2145 = vmatmul.mubr.msk.f32.vlgmr.msra.gmra.mrb[12].mxu1 %vm173_vm1, %v1407_v33 }
0x1296   :  { %2272 = vmatpush3.bf16.msra.mxu1 %v2594_v38  ;;  %2166 = vmatprep.mubr.msk.f32.mxu1 %vm2454_vm0, %v2455_v6 }
0x1297   :  { %2273 = vmatprep.subr.bf16.mxu1 %v2453_v3 }
0x129a   :  { %2275 = vmatpush3.bf16.msra.mxu1 %v2604_v42  ;;  %v1696_v42 = vrot.slane %v2650_v36, 6 }
0x129c   :  { %v1709_v54 = vsel %vm138_vm3, %v2626_v63, %v1696_v42 }
0x129d   :  { %v1710_v55 = vsel %vm142_vm5, %v1709_v54, %v1698_v48 }
0x129e   :  { %v1711_v36 = vsel %vm146_vm7, %v1710_v55, %v1700_v49 }
0x1368   :  { %v1476_v34 = vpop.f32.mrb[12].mxu1 }
0x1369   :  { %v1477_v35 = vadd.f32 %v2621_v50, %v1476_v34  ;;  %v2146_v37 = vpop.f32.mrb[13].mxu1  ;;  %v1712_v34 = vsel %vm138_vm3, %v2755_v40, %v1702_v7 }
0x136b   :  { %v1899_v39 = vmul.f32 -1.442695, %v1477_v35 }
0x136d   :  { %2372 = vpow2.f32 %v1899_v39 }
0x1377   :  { %v2373_v41 = vpop.eup %2372 }
0x1378   :  { %v1484_v43 = vadd.f32 1.0, %v2373_v41 }
0x137a   :  { %2374 = vrcp.f32 %v1484_v43 }
0x137b   :  { %2376 = vtanh.f32 %v1477_v35 }
0x1384   :  { %v2375_v44 = vpop.eup %2374 }
0x1385   :  { %1488 = vrot.lane.b32.xlu1 %v2375_v44, %s2456_s16  ;;  %v1492_v38 = vrot.slane %v2375_v44, 4  ;;  %v2377_v46 = vpop.eup %2376 }
0x1387   :  { %1493 = vrot.lane.b32.xlu0 %v1492_v38, %s2457_s17 }
0x13f7   :  { %v1489_v6 = vpop.permute.xlu1 %1488 }
0x13f8   :  { %v1491_v51 = vmul.f32 %v2377_v46, %v1489_v6 }
0x13f9   :  { %v1494_v3 = vpop.permute.xlu0 %1493 }
0x13fa   :  { %v1496_v45 = vmul.f32 %v1494_v3, %v1405_v32 }
0x13fc   :  { %v1498_v52 = vrot.slane %v1496_v45, 4 }
0x13fe   :  { %v2804_v53 = vadd.f32 %v1498_v52, %v1491_v51 }
0x1400   :  { %2156 = vmatmul.mubr.msk.f32.vlgmr.msra.gmra.mrb[14].mxu0 %vm173_vm1, %v2804_v53  ;;  %v1704_v31 = vrot.slane %v2804_v53, 4 }
0x1401   :  { %2177 = vmatprep.mubr.msk.f32.mxu0 %vm173_vm1, %v1711_v36  ;;  %2279 = vmatpush3.bf16.msra.mxu0 %v2276_v21 }
0x1402   :  { %v1713_v35 = vsel %vm142_vm5, %v1712_v34, %v1704_v31 }
0x14d3   :  { %v1570_v56 = vpop.f32.mrb[14].mxu0 }
0x14d4   :  { %v1575_v12 = vrot.slane %v1570_v56, 2  ;;  %v2157_v57 = vpop.f32.mrb[15].mxu0 }
0x14d6   :  { %v1577_v47 = vadd.f32 %v1575_v12, %v2739_v11 }
0x14d8   :  { %v1901_v58 = vmul.f32 -1.442695, %v1577_v47 }
0x14da   :  { %2378 = vpow2.f32 %v1901_v58 }
0x14e4   :  { %v2379_v59 = vpop.eup %2378 }
0x14e5   :  { %v1582_v60 = vadd.f32 1.0, %v2379_v59 }
0x14e7   :  { %2380 = vrcp.f32 %v1582_v60 }
0x14e8   :  { %2382 = vtanh.f32 %v1577_v47 }
0x14f1   :  { %v2381_v63 = vpop.eup %2380 }
0x14f2   :  { %1586 = vrot.lane.b32.xlu1 %v2381_v63, %s2456_s16  ;;  %v1590_v61 = vrot.slane %v2381_v63, 6  ;;  %v2383_v2 = vpop.eup %2382 }
0x14f4   :  { %1591 = vrot.lane.b32.xlu0 %v1590_v61, %s2457_s17 }
0x1564   :  { %v1587_v62 = vpop.permute.xlu1 %1586 }
0x1565   :  { %v1589_v5 = vmul.f32 %v2383_v2, %v1587_v62 }
0x1566   :  { %v1592_v0 = vpop.permute.xlu0 %1591 }
0x1567   :  { %v1594_v1 = vmul.f32 %v1592_v0, %v2804_v53 }
0x1569   :  { %v1596_v8 = vrot.slane %v1594_v1, 2 }
0x156b   :  { %v1598_v11 = vadd.f32 %v1596_v8, %v1589_v5 }
0x156d   :  { %v1600_v9 = vrot.slane %v1598_v11, 6 }
0x156f   :  { %2167 = vmatmul.mubr.msk.f32.vlgmr.msra.gmra.mrb[14].mxu1 %vm173_vm1, %v1600_v9 }
0x1642   :  { %v1669_v10 = vpop.f32.mrb[14].mxu1 }
0x1643   :  { %v1670_v13 = vadd.f32 %v2621_v50, %v1669_v10  ;;  %v2168_v14 = vpop.f32.mrb[15].mxu1  ;;  %v1717_v50 = vld [vmem:[%s2873_s6 + $0x10] sm:$0xff]  ;;  %s2458_s6 = smov [#allocation6]  }
0x1644   :  { %v2280_v23 = vpack.c.bf16 %v1718_v22, %v1717_v50 }
0x1645   :  { %v1903_v15 = vmul.f32 -1.442695, %v1670_v13 }
0x1646   :  { %2281 = vmatprep.subr.bf16.mxu0 %v2280_v23 }
0x1647   :  { %2384 = vpow2.f32 %v1903_v15  ;;  %2283 = vmatpush3.bf16.msra.mxu0 %v2280_v23 }
0x1651   :  { %v2385_v16 = vpop.eup %2384 }
0x1652   :  { %v1677_v17 = vadd.f32 1.0, %v2385_v16 }
0x1654   :  { %2386 = vrcp.f32 %v1677_v17 }
0x1655   :  { %2388 = vtanh.f32 %v1670_v13 }
0x165e   :  { %v2387_v24 = vpop.eup %2386 }
0x165f   :  { %1681 = vrot.lane.b32.xlu1 %v2387_v24, %s2456_s16  ;;  %v1685_v25 = vrot.slane %v2387_v24, 2  ;;  %v2389_v30 = vpop.eup %2388  ;;  %s1827_s16 = sshll.u32 %s2458_s6, 4  ;;  %s1828_s16 = int_to_ptr.vmem [resolvable:$true] %s1827_s16 }
0x1660   :  { %p2407_p6 = scmp.lt.s32.totalorder %s1828_s16, %s1828_s16 }
0x1661   :  { %1686 = vrot.lane.b32.xlu0 %v1685_v25, %s2457_s17  ;;  %s2402_s17 = scalar_lea.vmem %s1828_s16, 32 }
0x1662   :  { %p2403_p5 = scmp.ne.s32.totalorder %s1828_s16, %s2402_s17  ;;  %p2408_p7 = scmp.lt.s32.totalorder %s2402_s17, %s2402_s17 }
0x1664   :  { %p2409_p8 = por %p2408_p7, %p2407_p6 }
0x1666   :  { %p2410_p9 = pnand %p2409_p8, %p2403_p5 }
0x16d1   :  { %v1682_v26 = vpop.permute.xlu1 %1681 }
0x16d2   :  { %v1684_v28 = vmul.f32 %v2389_v30, %v1682_v26 }
0x16d3   :  { %v1687_v4 = vpop.permute.xlu0 %1686 }
0x16d4   :  { %v1689_v27 = vmul.f32 %v1687_v4, %v1598_v11 }
0x16d6   :  { %v1691_v29 = vrot.slane %v1689_v27, 6 }
0x16d8   :  { %v1693_v32 = vadd.f32 %v1691_v29, %v1684_v28 }
0x16da   :  { %v1707_v33 = vrot.slane %v1693_v32, 2  ;;  %1695 = vst.msk [vmem:[#allocation6] sm:$0x3] %vm1694_vm9, %v1693_v32 }
0x16dc   :  { %v1714_v37 = vsel %vm146_vm7, %v1713_v35, %v1707_v33 }
0x16dd   :  { %2178 = vmatmul.mubr.msk.f32.vlgmr.msra.gmra.mrb[16].mxu0 %vm173_vm1, %v1714_v37 }
0x16de   :  { %2413 = shalt.err (!%p2410_p9)
}
0x16df   :  { %s2414_s11 = scalar_lea.hbm %s2876_s9, 32 }
0x16e0   :  { %p2415_p10 = scmp.ne.s32.totalorder %s2876_s9, %s2414_s11  ;;  %p2418_p11 = scmp.lt.u32.totalorder %s2414_s11, %s2876_s9 }
0x16e2   :  { %p2420_p12 = pnand %p2418_p11, %p2415_p10 }
0x16e4   :  { %2423 = shalt.err (!%p2420_p12)
}
0x16e5   :  { %1830 = dma.vmem_to_hbm [thread:$0]  %s1828_s16, 32, %s2876_s9, [#allocation7]   ;;  %v1904_v40 = vld [vmem:[%s2874_s7] ss:$0 sm:$0xff] }
0x16e6   :  { %s2459_s19 = smov [#allocation5]  }
0x16e7   :  { %s1814_s20 = sshll.u32 %s2459_s19, 4  ;;  %s1815_s20 = int_to_ptr.vmem [resolvable:$true] %s1814_s20 }
0x16e8   :  { %s2424_s21 = scalar_lea.vmem %s1815_s20, 256  ;;  %p2429_p0 = scmp.lt.s32.totalorder %s1815_s20, %s1815_s20 }
0x16e9   :  { %p2425_p13 = scmp.ne.s32.totalorder %s1815_s20, %s2424_s21  ;;  %p2430_p1 = scmp.lt.s32.totalorder %s2424_s21, %s2424_s21 }
0x16eb   :  { %p2431_p2 = por %p2430_p1, %p2429_p0 }
0x16ed   :  { %p2432_p3 = pnand %p2431_p2, %p2425_p13 }
0x17b0   :  { %v2179_v18 = vpop.f32.mrb[16].mxu0 }
0x17b1   :  { %v1804_v39 = vadd.f32 %v2179_v18, %v1904_v40  ;;  %v1798_v41 = vpop.f32.mrb[17].mxu0 }
0x17b2   :  { %v1799_v43 = vadd.f32 %v1904_v40, %v1798_v41 }
0x17b3   :  { %1808 = vst [vmem:[#allocation5 + $0x8] sm:$0xff] %v1804_v39 }
0x17b4   :  { %1807 = vst [vmem:[#allocation5] sm:$0xff] %v1799_v43 }
0x17b5   :  { %2435 = shalt.err (!%p2432_p3)
}
0x17b6   :  { %s2436_s7 = scalar_lea.hbm %s2875_s8, 256 }
0x17b7   :  { %p2437_p4 = scmp.ne.s32.totalorder %s2875_s8, %s2436_s7  ;;  %p2440_p5 = scmp.lt.u32.totalorder %s2436_s7, %s2875_s8 }
0x17b9   :  { %p2442_p6 = pnand %p2440_p5, %p2437_p4 }
0x17bb   :  { %2445 = shalt.err (!%p2442_p6)
}
0x17bc   :  { %s2460_s24 = smov 128   ;;  %s2461_s25 = smov 8  }
0x17bd   :  { %1820 = dma.vmem_to_hbm [thread:$0]  %s1815_s20, 256, %s2875_s8, [#allocation3], %s2460_s24, %s2460_s24, %s2461_s25  }
0x17be   :  { %2448 = dma.done.wait [#allocation3], 256  }
0x17bf   :  { %2449 = vsyncadd [#allocation3], 4294967040 }
0x17c0   :  { %2450 = dma.done.wait [#allocation7], 32  }
0x17c1   :  { %2451 = vsyncadd [#allocation7], 4294967264 }
0x17c2   :  { %1837 = vsyncpa [#allocation3], 1 }
0x17c3   :  { %1838 = vsyncpa [#allocation7], 1 }
0x17c4   :  { %1839 = vsyncpa [#allocation4], 1 }

</bundles_post_ra>
